<compile_context>
chip_gen: v7x
topology: tpu7x:2x2x1
jax: 0.10.0
libtpu: 0.0.40
codegen_flags: <defaults>
</compile_context>

<pallas_src>
import math
import functools

import jax
import jax.numpy as jnp
from jax.experimental import pallas as pl
from jax.experimental.pallas import tpu as pltpu


LANE = 128                      # TPU vreg lane width
VMEM_BUDGET = 32 * 1024 * 1024  # explicit scoped-VMEM budget (safe on v5e/v6e/v7x)


def _pad128(n):
    return ((n + LANE - 1) // LANE) * LANE


# ----------------------------------------------------------------------------
# Pallas kernel 1: encoder = fused RevIN-'norm' affine + MLP, gridded over B
# ----------------------------------------------------------------------------
def _encoder_kernel(x_ref, ns_ref, nb_ref, *refs):
    o_ref = refs[-1]
    wrefs = refs[:-1]
    n_lin = len(wrefs) // 2
    # Fused RevIN norm:  y = x * (w/std) + (b - mean*w/std)  (per-batch affine).
    h = x_ref[...] * ns_ref[...] + nb_ref[...]            # (freq, PCp) f32
    for i in range(n_lin):
        W = wrefs[2 * i][...]                              # bf16 (dIn_p, dOut_p)
        b = wrefs[2 * i + 1][...]                          # f32  (1, dOut_p)
        h = jnp.dot(h.astype(jnp.bfloat16), W,
                    preferred_element_type=jnp.float32) + b
        if i < n_lin - 1:
            h = jnp.maximum(h, 0.0)                        # ReLU
    o_ref[...] = h.astype(o_ref.dtype)


def encode(xp, nscale, nshift, enc_params):
    """xp: (B, freq, PCp) raw patched input; nscale/nshift: (B, 1, PCp)."""
    B, freq, PCp = xp.shape
    Ep = enc_params[-1][0].shape[1]
    flat = []
    in_specs = [
        pl.BlockSpec((None, freq, PCp), lambda b: (b, 0, 0)),
        pl.BlockSpec((None, 1, PCp), lambda b: (b, 0, 0)),
        pl.BlockSpec((None, 1, PCp), lambda b: (b, 0, 0)),
    ]
    for W, bias in enc_params:
        in_specs.append(pl.BlockSpec(W.shape, lambda b: (0, 0)))
        in_specs.append(pl.BlockSpec(bias.shape, lambda b: (0, 0)))
        flat += [W, bias]
    # TODO(synk): at production B, group several batch elements per grid step
    #   (row tile 256-512) instead of one batch per step.
    return pl.pallas_call(
        _encoder_kernel,
        out_shape=jax.ShapeDtypeStruct((B, freq, Ep), jnp.float32),
        grid=(B,),
        in_specs=in_specs,
        out_specs=pl.BlockSpec((None, freq, Ep), lambda b: (b, 0, 0)),
        compiler_params=pltpu.CompilerParams(
            dimension_semantics=("parallel",),
            vmem_limit_bytes=VMEM_BUDGET),
    )(xp, nscale, nshift, *flat)


# ----------------------------------------------------------------------------
# Pallas kernel 2: latent dynamics, batched over B (gridless)
# ----------------------------------------------------------------------------
def _dynamics_kernel(z_ref, eps_ref, K_ref, Waux_ref, baux_ref, A_ref,
                     adiag_ref, hobs_ref, q_ref, r_ref, p0_ref,
                     xrec_ref, dyn_ref):
    f32 = jnp.float32
    z = z_ref[...]                                   # (B, freq, E)
    B, freq, E = z.shape
    step = eps_ref.shape[1]
    K = K_ref[...]                                   # (E, E)

    # --- KPLayer one-step reconstruction: x_rec = [z_0, z_{:-1} @ K] per batch.
    z2 = z.reshape(B * freq, E)
    zK = jnp.dot(z2, K, preferred_element_type=f32).reshape(B, freq, E)
    # Vectorized over B (single concat, no per-batch masked row stores).
    xrec_ref[...] = jnp.concatenate([z[:, :1, :], zK[:, :freq - 1, :]], axis=1)

    # --- AuxiliaryNet residual: one batched contraction over the time axis.
    xres_tail = z[:, 1:, :] - zK[:, :freq - 1, :]    # (B, freq-1, E); row 0 is 0
    Wt = Waux_ref[...][:, 1:]                        # (step, freq-1)
    Wt_b = jnp.broadcast_to(Wt[None], (B, step, freq - 1))
    resid = jnp.einsum('bsf,bfe->bse', Wt_b, xres_tail,
                       preferred_element_type=f32) + baux_ref[...]   # (B, step, E)

    # --- Koopman observation rollout, batched:  Y_t = z_last @ K^t
    # (one (B,E)@(E,step*E) matmul instead of a serial per-step chain).
    zlast = z[:, freq - 1, :]                        # (B, E)
    Kpows = []
    cur = K
    for _ in range(step):
        Kpows.append(cur)
        cur = jnp.dot(cur, K, preferred_element_type=f32)
    Kcat = jnp.concatenate(Kpows, axis=1)            # (E, step*E)
    Yall = jnp.dot(zlast, Kcat, preferred_element_type=f32)   # (B, step*E)

    # --- Diagonal Kalman filter + prior rsample (f32 recurrence).
    A = A_ref[...]
    a2 = adiag_ref[...] ** 2                         # (1, E)
    hobs = hobs_ref[...]
    Q = q_ref[...]
    R = r_ref[...]
    eps = eps_ref[...]                               # (B, step, E)

    x = zlast                                        # Kalman state
    P = jnp.broadcast_to(p0_ref[...], (B, E))        # diag covariance
    preds, means, scales = [], [], []
    for t in range(step):                            # static unroll, batched over B
        y = Yall[:, t * E:(t + 1) * E]               # observation
        x = jnp.dot(x, A, preferred_element_type=f32)        # predict
        P = a2 * P + Q
        v = y - x * hobs                                      # innovation
        S = hobs * hobs * P + R
        Kg = P * hobs / S
        x = x + Kg * v                                        # update
        P = (1.0 - Kg * hobs) * P
        scale = jnp.sqrt(P)
        means.append(x)
        scales.append(scale)
        rsample = x + scale * eps[:, t, :]                    # prior.rsample()
        # pred = kalman_mean + residual (encode) + rsample (forward)
        preds.append(x + resid[:, t, :] + rsample)

    pred = jnp.stack(preds, axis=1)                  # (B, step, E)
    pmean = jnp.stack(means, axis=1)
    pscale = jnp.stack(scales, axis=1)
    # Pack the three outputs into one lane-dense slab (single unmasked store).
    dyn_ref[...] = jnp.concatenate([pred, pmean, pscale], axis=-1)


def dynamics(z, eps, p):
    B, freq, Ep = z.shape
    step = eps.shape[1]
    return pl.pallas_call(
        _dynamics_kernel,
        out_shape=(jax.ShapeDtypeStruct((B, freq, Ep), jnp.float32),
                   jax.ShapeDtypeStruct((B, step, 3 * Ep), jnp.float32)),
        compiler_params=pltpu.CompilerParams(vmem_limit_bytes=VMEM_BUDGET),
    )(z, eps, p["K"], p["Waux"], p["baux"], p["A"], p["adiag"],
      p["h"], p["q"], p["r"], p["p0"])


# ----------------------------------------------------------------------------
# Pallas kernel 3: fused decoder (mu + sigma + RevIN denorm + softplus),
# gridded over B
# ----------------------------------------------------------------------------
def _decoder_kernel(rec_ref, pred_ref, ds_ref, db_ref, *refs,
                    n_lin_mu, n_lin_sg):
    murec_ref, mupred_ref, sig_ref = refs[-3], refs[-2], refs[-1]
    wrefs = refs[:-3]
    mu_w = wrefs[:2 * n_lin_mu]
    sg_w = wrefs[2 * n_lin_mu:2 * n_lin_mu + 2 * n_lin_sg]

    def run_mlp(h, ws, n_lin):
        for i in range(n_lin):
            W = ws[2 * i][...]                        # bf16
            b = ws[2 * i + 1][...]                    # f32
            h = jnp.dot(h.astype(jnp.bfloat16), W,
                        preferred_element_type=jnp.float32) + b
            if i < n_lin - 1:
                h = jnp.maximum(h, 0.0)
        return h

    ds = ds_ref[...]                                  # (1, PCp) denorm scale
    db = db_ref[...]                                  # (1, PCp) denorm shift
    rec = rec_ref[...]                                # (freq, Ep)
    pred = pred_ref[...]                              # (step, Ep)
    freq = rec.shape[0]

    # decoder_mu over rec+pred in a single pass (latents read once).
    zc = jnp.concatenate([rec, pred], axis=0)         # (freq+step, Ep)
    mu = run_mlp(zc, mu_w, n_lin_mu) * ds + db        # fused RevIN denorm
    murec_ref[...] = mu[:freq]
    mupred_ref[...] = mu[freq:]

    # decoder_sigma only on the pred rows.
    sg = run_mlp(pred, sg_w, n_lin_sg) * ds + db
    # Stable softplus(x) = max(x,0) + log(1 + exp(-|x|))  (EUP slot)
    sp = jnp.maximum(sg, 0.0) + jnp.log(1.0 + jnp.exp(-jnp.abs(sg)))
    sig_ref[...] = sp + 1e-6


def decode(xrec, pred, dscale, dshift, mu_params, sg_params):
    B, freq, Ep = xrec.shape
    step = pred.shape[1]
    PCp = mu_params[-1][0].shape[1]
    flat = []
    in_specs = [
        pl.BlockSpec((None, freq, Ep), lambda b: (b, 0, 0)),
        pl.BlockSpec((None, step, Ep), lambda b: (b, 0, 0)),
        pl.BlockSpec((None, 1, PCp), lambda b: (b, 0, 0)),
        pl.BlockSpec((None, 1, PCp), lambda b: (b, 0, 0)),
    ]
    for W, bias in mu_params + sg_params:
        in_specs.append(pl.BlockSpec(W.shape, lambda b: (0, 0)))
        in_specs.append(pl.BlockSpec(bias.shape, lambda b: (0, 0)))
        flat += [W, bias]
    kern = functools.partial(_decoder_kernel,
                             n_lin_mu=len(mu_params), n_lin_sg=len(sg_params))
    return pl.pallas_call(
        kern,
        out_shape=(jax.ShapeDtypeStruct((B, freq, PCp), jnp.float32),
                   jax.ShapeDtypeStruct((B, step, PCp), jnp.float32),
                   jax.ShapeDtypeStruct((B, step, PCp), jnp.float32)),
        grid=(B,),
        in_specs=in_specs,
        out_specs=(pl.BlockSpec((None, freq, PCp), lambda b: (b, 0, 0)),
                   pl.BlockSpec((None, step, PCp), lambda b: (b, 0, 0)),
                   pl.BlockSpec((None, step, PCp), lambda b: (b, 0, 0))),
        compiler_params=pltpu.CompilerParams(
            dimension_semantics=("parallel",),
            vmem_limit_bytes=VMEM_BUDGET),
    )(xrec, pred, dscale, dshift, *flat)


# ----------------------------------------------------------------------------
# Parameter init (deterministic, synthetic), zero-padded to 128-lane features
# ----------------------------------------------------------------------------
def init_linear(key, f_in, f_out):
    kw, kb = jax.random.split(key)
    lim = 1.0 / math.sqrt(f_in)
    W = jax.random.uniform(kw, (f_in, f_out), jnp.float32, -lim, lim)
    b = jax.random.uniform(kb, (1, f_out), jnp.float32, -lim, lim)
    return W, b


def init_k2vae_params(cfg, seed=42):
    C = cfg["n_vars"]
    E = cfg["dynamic_dim"]
    P = cfg["patch_len"]
    H = cfg["hidden_dim"]
    HL = cfg["hidden_layers"]
    freq = math.ceil(cfg["seq_len"] / P)
    step = math.ceil(cfg["pred_len"] / P)
    PC = P * C
    Ep, Hp, PCp = _pad128(E), _pad128(H), _pad128(PC)
    ks = jax.random.split(jax.random.PRNGKey(seed), 8)

    def mk_mlp(key, f_in, f_out, fin_p, fout_p):
        # Koopa-style MLP: Linear(f_in,h)+ReLU, ..., Linear(h,f_out).
        dims = [f_in] + [H] * (HL - 1) + [f_out]
        pdims = [fin_p] + [Hp] * (HL - 1) + [fout_p]
        keys = jax.random.split(key, len(dims) - 1)
        layers = []
        for i, k in enumerate(keys):
            W, b = init_linear(k, dims[i], dims[i + 1])
            # Zero padding keeps valid columns exact; weights stored bf16.
            Wp = jnp.zeros((pdims[i], pdims[i + 1]), jnp.float32)
            Wp = Wp.at[:dims[i], :dims[i + 1]].set(W).astype(jnp.bfloat16)
            bp = jnp.zeros((1, pdims[i + 1]), jnp.float32).at[:, :dims[i + 1]].set(b)
            layers.append((Wp, bp))
        return layers

    def pad_sq(M):
        return jnp.zeros((Ep, Ep), jnp.float32).at[:E, :E].set(M)

    def pad_vec(v, fill=0.0):
        return jnp.full((1, Ep), fill, jnp.float32).at[:, :E].set(v)

    K = jnp.eye(E, dtype=jnp.float32) + 0.01 * jax.random.normal(ks[3], (E, E))
    A = 0.9 * jnp.eye(E, dtype=jnp.float32) + 0.01 * jax.random.normal(ks[4], (E, E))

    params = {
        "encoder": mk_mlp(ks[0], PC, E, PCp, Ep),
        "decoder_mu": mk_mlp(ks[1], E, PC, Ep, PCp),
        "decoder_sigma": mk_mlp(ks[2], E, PC, Ep, PCp),
        "revin_w": jnp.ones((1, C), jnp.float32),
        "revin_b": jnp.zeros((1, C), jnp.float32),
        # KPLayer operator (init_koopman='identity' + small perturbation)
        "K": pad_sq(K),
        # AuxiliaryNet: time-mixing freq -> step
        "Waux": 0.1 * jax.random.normal(ks[5], (step, freq)).astype(jnp.float32),
        "baux": pad_vec(jnp.zeros((1, E), jnp.float32)),
        # KalmanFilter params (init_kalman); pad lanes chosen so padded columns
        # stay exactly zero and finite (r padded with 1 keeps S > 0).
        "A": pad_sq(A),
        "adiag": pad_vec(jnp.diagonal(A).reshape(1, E)),
        "h": pad_vec(jnp.ones((1, E), jnp.float32)),
        "q": pad_vec(0.01 * jnp.ones((1, E), jnp.float32)),
        "r": pad_vec(0.01 * jnp.ones((1, E), jnp.float32), fill=1.0),
        "p0": pad_vec(jnp.ones((1, E), jnp.float32)),
    }
    return params


# ----------------------------------------------------------------------------
# k2VAE forward (encode -> prior rsample -> decode)
# ----------------------------------------------------------------------------
def k2vae_forward(params, x, key, *, cfg):
    B, L, C = x.shape
    P = cfg["patch_len"]
    E = cfg["dynamic_dim"]
    input_len = cfg["seq_len"]
    pred_len = cfg["pred_len"]
    freq = math.ceil(input_len / P)
    step = math.ceil(pred_len / P)
    pad = P * freq - input_len
    PC = P * C
    PCp, Ep = _pad128(PC), _pad128(E)

    # ---- RevIN statistics: tiny reduction, plain XLA (no dedicated kernel) ----
    mean = jnp.mean(x, axis=1)                                   # (B, C)
    std = jnp.sqrt(jnp.mean((x - mean[:, None, :]) ** 2, axis=1) + 1e-5)

    w = params["revin_w"]
    ab = params["revin_b"]
    nscale = w / std                                             # norm affine
    nshift = ab - mean * nscale
    dscale = std / (w + 1e-10)                                   # denorm affine
    dshift = mean - ab * dscale

    def to_row(a):                                               # (B,C) -> (B,1,PCp)
        a = jnp.tile(a, (1, P))                                  # feature j = p*C + c
        a = jnp.pad(a, ((0, 0), (0, PCp - PC)))
        return a[:, None, :]

    nscale3, nshift3, dscale3, dshift3 = (to_row(a) for a in
                                          (nscale, nshift, dscale, dshift))

    # ---- patchify the RAW series (norm affine is fused into the encoder) ----
    if pad > 0:
        xin = jnp.concatenate([x[:, L - pad:, :], x], axis=1)    # front padding
    else:
        xin = x
    xp = xin.reshape(B, freq, PC)
    xp = jnp.pad(xp, ((0, 0), (0, 0), (0, PCp - PC)))

    # ---- encode ----
    z = encode(xp, nscale3, nshift3, params["encoder"])          # Pallas 1

    # TODO(synk): move to in-kernel PRNG (pltpu.prng_seed + stateful_normal).
    eps = jax.random.normal(key, (B, step, Ep), jnp.float32)
    xrec, dyn = dynamics(z, eps, params)                         # Pallas 2

    pred = dyn[:, :, :Ep]                                        # (B, step, Ep)
    prior_mean = dyn[:, :, Ep:2 * Ep][:, :, :E]                  # (B, step, E)
    prior_scale = dyn[:, :, 2 * Ep:3 * Ep][:, :, :E]

    # ---- decode (mu + sigma + denorm + softplus fused) ----
    mu_rec, mu_pred, sig_pred = decode(xrec, pred, dscale3, dshift3,
                                       params["decoder_mu"],
                                       params["decoder_sigma"])  # Pallas 3

    rec = mu_rec[:, :, :PC].reshape(B, freq * P, C)[:, :input_len, :]
    mu = mu_pred[:, :, :PC].reshape(B, step * P, C)[:, :pred_len, :]
    post_scale = sig_pred[:, :, :PC].reshape(B, step * P, C)[:, :pred_len, :]

    return rec, (prior_mean, prior_scale), (mu, post_scale)


# ----------------------------------------------------------------------------
if __name__ == "__main__":
    cfg = dict(seq_len=30, pred_len=16, patch_len=8, n_vars=4,
               dynamic_dim=16, hidden_dim=32, hidden_layers=2, multistep=False)

    params = init_k2vae_params(cfg, seed=42)

    B = 2
    x = jax.random.normal(jax.random.PRNGKey(0),
                          (B, cfg["seq_len"], cfg["n_vars"]), jnp.float32)

    fwd = jax.jit(functools.partial(k2vae_forward, cfg=cfg))
    rec, (prior_mu, prior_sc), (post_mu, post_sc) = fwd(params, x,
                                                        jax.random.PRNGKey(1))
    jax.block_until_ready((rec, prior_mu, prior_sc, post_mu, post_sc))

    freq = math.ceil(cfg["seq_len"] / cfg["patch_len"])
    step = math.ceil(cfg["pred_len"] / cfg["patch_len"])
    assert rec.shape == (B, cfg["seq_len"], cfg["n_vars"])
    assert prior_mu.shape == (B, step, cfg["dynamic_dim"])
    assert prior_sc.shape == (B, step, cfg["dynamic_dim"])
    assert post_mu.shape == (B, cfg["pred_len"], cfg["n_vars"])
    assert post_sc.shape == (B, cfg["pred_len"], cfg["n_vars"])
    assert bool(jnp.all(jnp.isfinite(rec)))
    assert bool(jnp.all(jnp.isfinite(post_mu)))
    assert bool(jnp.all(post_sc > 0.0))
    assert bool(jnp.all(prior_sc > 0.0))

    print("KERNEL_OK")
</pallas_src>

<mosaic_0001>
module attributes {stable_mosaic.version = 11 : i64} {
  func.func @_decoder_kernel(%arg0: i32, %arg1: memref<1x4x128xf32, #tpu.memory_space<vmem>>, %arg2: memref<1x2x128xf32, #tpu.memory_space<vmem>>, %arg3: memref<1x1x128xf32, #tpu.memory_space<vmem>>, %arg4: memref<1x1x128xf32, #tpu.memory_space<vmem>>, %arg5: memref<128x128xbf16, #tpu.memory_space<vmem>>, %arg6: memref<1x128xf32, #tpu.memory_space<vmem>>, %arg7: memref<128x128xbf16, #tpu.memory_space<vmem>>, %arg8: memref<1x128xf32, #tpu.memory_space<vmem>>, %arg9: memref<128x128xbf16, #tpu.memory_space<vmem>>, %arg10: memref<1x128xf32, #tpu.memory_space<vmem>>, %arg11: memref<128x128xbf16, #tpu.memory_space<vmem>>, %arg12: memref<1x128xf32, #tpu.memory_space<vmem>>, %arg13: memref<1x4x128xf32, #tpu.memory_space<vmem>>, %arg14: memref<1x2x128xf32, #tpu.memory_space<vmem>>, %arg15: memref<1x2x128xf32, #tpu.memory_space<vmem>>) attributes {dimension_semantics = [#tpu.dimension_semantics<parallel>], iteration_bounds = array<i64: 2>, scalar_prefetch = 0 : i64, scratch_operands = 0 : i64, tpu.core_type = #tpu.core_type<tc>, window_params = [{transform_indices = @transform_0, window_bounds = array<i64: 1, 4, 128>}, {transform_indices = @transform_1, window_bounds = array<i64: 1, 2, 128>}, {transform_indices = @transform_2, window_bounds = array<i64: 1, 1, 128>}, {transform_indices = @transform_3, window_bounds = array<i64: 1, 1, 128>}, {pipeline_mode = #tpu.pipeline_mode<synchronous>, transform_indices = @transform_4, window_bounds = array<i64: 128, 128>}, {pipeline_mode = #tpu.pipeline_mode<synchronous>, transform_indices = @transform_5, window_bounds = array<i64: 1, 128>}, {pipeline_mode = #tpu.pipeline_mode<synchronous>, transform_indices = @transform_6, window_bounds = array<i64: 128, 128>}, {pipeline_mode = #tpu.pipeline_mode<synchronous>, transform_indices = @transform_7, window_bounds = array<i64: 1, 128>}, {pipeline_mode = #tpu.pipeline_mode<synchronous>, transform_indices = @transform_8, window_bounds = array<i64: 128, 128>}, {pipeline_mode = #tpu.pipeline_mode<synchronous>, transform_indices = @transform_9, window_bounds = array<i64: 1, 128>}, {pipeline_mode = #tpu.pipeline_mode<synchronous>, transform_indices = @transform_10, window_bounds = array<i64: 128, 128>}, {pipeline_mode = #tpu.pipeline_mode<synchronous>, transform_indices = @transform_11, window_bounds = array<i64: 1, 128>}, {transform_indices = @transform_12, window_bounds = array<i64: 1, 4, 128>}, {transform_indices = @transform_13, window_bounds = array<i64: 1, 2, 128>}, {transform_indices = @transform_14, window_bounds = array<i64: 1, 2, 128>}]} {
    %c0 = arith.constant 0 : index
    %c0_0 = arith.constant 0 : index
    %c0_1 = arith.constant 0 : index
    %0 = vector.load %arg3[%c0, %c0_0, %c0_1] : memref<1x1x128xf32, #tpu.memory_space<vmem>>, vector<1x1x128xf32>
    %1 = vector.shape_cast %0 : vector<1x1x128xf32> to vector<1x128xf32>
    %c0_2 = arith.constant 0 : index
    %c0_3 = arith.constant 0 : index
    %c0_4 = arith.constant 0 : index
    %2 = vector.load %arg4[%c0_2, %c0_3, %c0_4] : memref<1x1x128xf32, #tpu.memory_space<vmem>>, vector<1x1x128xf32>
    %3 = vector.shape_cast %2 : vector<1x1x128xf32> to vector<1x128xf32>
    %c0_5 = arith.constant 0 : index
    %c0_6 = arith.constant 0 : index
    %c0_7 = arith.constant 0 : index
    %4 = vector.load %arg1[%c0_5, %c0_6, %c0_7] : memref<1x4x128xf32, #tpu.memory_space<vmem>>, vector<1x4x128xf32>
    %5 = vector.shape_cast %4 : vector<1x4x128xf32> to vector<4x128xf32>
    %c0_8 = arith.constant 0 : index
    %c0_9 = arith.constant 0 : index
    %c0_10 = arith.constant 0 : index
    %6 = vector.load %arg2[%c0_8, %c0_9, %c0_10] : memref<1x2x128xf32, #tpu.memory_space<vmem>>, vector<1x2x128xf32>
    %7 = vector.shape_cast %6 : vector<1x2x128xf32> to vector<2x128xf32>
    %8 = tpu.concatenate %5, %7 in 0 : vector<4x128xf32>, vector<2x128xf32> -> vector<6x128xf32>
    %c0_11 = arith.constant 0 : index
    %c0_12 = arith.constant 0 : index
    %9 = vector.load %arg5[%c0_11, %c0_12] : memref<128x128xbf16, #tpu.memory_space<vmem>>, vector<128x128xbf16>
    %c0_13 = arith.constant 0 : index
    %c0_14 = arith.constant 0 : index
    %10 = vector.load %arg6[%c0_13, %c0_14] : memref<1x128xf32, #tpu.memory_space<vmem>>, vector<1x128xf32>
    %11 = arith.truncf %8 : vector<6x128xf32> to vector<6x128xbf16>
    %cst = arith.constant dense<0.000000e+00> : vector<6x128xf32>
    %12 = tpu.matmul %11, %9, %cst {dimension_numbers = #tpu.dot_dimension_numbers<[1], [0], [0], [1], [0, 0, 1, 1], [], []>} : vector<6x128xbf16>, vector<128x128xbf16>, vector<6x128xf32> -> vector<6x128xf32>
    %13 = vector.broadcast %10 : vector<1x128xf32> to vector<6x128xf32>
    %14 = arith.addf %12, %13 : vector<6x128xf32>
    %cst_15 = arith.constant 0.000000e+00 : f32
    %15 = vector.broadcast %cst_15 : f32 to vector<6x128xf32>
    %16 = arith.maximumf %14, %15 : vector<6x128xf32>
    %c0_16 = arith.constant 0 : index
    %c0_17 = arith.constant 0 : index
    %17 = vector.load %arg7[%c0_16, %c0_17] : memref<128x128xbf16, #tpu.memory_space<vmem>>, vector<128x128xbf16>
    %c0_18 = arith.constant 0 : index
    %c0_19 = arith.constant 0 : index
    %18 = vector.load %arg8[%c0_18, %c0_19] : memref<1x128xf32, #tpu.memory_space<vmem>>, vector<1x128xf32>
    %19 = arith.truncf %16 : vector<6x128xf32> to vector<6x128xbf16>
    %cst_20 = arith.constant dense<0.000000e+00> : vector<6x128xf32>
    %20 = tpu.matmul %19, %17, %cst_20 {dimension_numbers = #tpu.dot_dimension_numbers<[1], [0], [0], [1], [0, 0, 1, 1], [], []>} : vector<6x128xbf16>, vector<128x128xbf16>, vector<6x128xf32> -> vector<6x128xf32>
    %21 = vector.broadcast %18 : vector<1x128xf32> to vector<6x128xf32>
    %22 = arith.addf %20, %21 : vector<6x128xf32>
    %23 = vector.broadcast %1 : vector<1x128xf32> to vector<6x128xf32>
    %24 = arith.mulf %22, %23 : vector<6x128xf32>
    %25 = vector.broadcast %3 : vector<1x128xf32> to vector<6x128xf32>
    %26 = arith.addf %24, %25 : vector<6x128xf32>
    %27 = vector.extract_strided_slice %26 {offsets = [0, 0], sizes = [4, 128], strides = [1, 1]} : vector<6x128xf32> to vector<4x128xf32>
    %c0_21 = arith.constant 0 : index
    %c0_22 = arith.constant 0 : index
    %c0_23 = arith.constant 0 : index
    %28 = vector.load %arg13[%c0_21, %c0_22, %c0_23] : memref<1x4x128xf32, #tpu.memory_space<vmem>>, vector<1x4x128xf32>
    %29 = vector.shape_cast %28 : vector<1x4x128xf32> to vector<4x128xf32>
    %30 = vector.shape_cast %27 : vector<4x128xf32> to vector<1x4x128xf32>
    tpu.vector_store %arg13[%c0_21, %c0_22, %c0_23], %30 {strides = array<i32>} : memref<1x4x128xf32, #tpu.memory_space<vmem>>, vector<1x4x128xf32>,
    %31 = vector.extract_strided_slice %26 {offsets = [4, 0], sizes = [2, 128], strides = [1, 1]} : vector<6x128xf32> to vector<2x128xf32>
    %c0_24 = arith.constant 0 : index
    %c0_25 = arith.constant 0 : index
    %c0_26 = arith.constant 0 : index
    %32 = vector.load %arg14[%c0_24, %c0_25, %c0_26] : memref<1x2x128xf32, #tpu.memory_space<vmem>>, vector<1x2x128xf32>
    %33 = vector.shape_cast %32 : vector<1x2x128xf32> to vector<2x128xf32>
    %34 = vector.shape_cast %31 : vector<2x128xf32> to vector<1x2x128xf32>
    tpu.vector_store %arg14[%c0_24, %c0_25, %c0_26], %34 {strides = array<i32>} : memref<1x2x128xf32, #tpu.memory_space<vmem>>, vector<1x2x128xf32>,
    %c0_27 = arith.constant 0 : index
    %c0_28 = arith.constant 0 : index
    %35 = vector.load %arg9[%c0_27, %c0_28] : memref<128x128xbf16, #tpu.memory_space<vmem>>, vector<128x128xbf16>
    %c0_29 = arith.constant 0 : index
    %c0_30 = arith.constant 0 : index
    %36 = vector.load %arg10[%c0_29, %c0_30] : memref<1x128xf32, #tpu.memory_space<vmem>>, vector<1x128xf32>
    %37 = arith.truncf %7 : vector<2x128xf32> to vector<2x128xbf16>
    %cst_31 = arith.constant dense<0.000000e+00> : vector<2x128xf32>
    %38 = tpu.matmul %37, %35, %cst_31 {dimension_numbers = #tpu.dot_dimension_numbers<[1], [0], [0], [1], [0, 0, 1, 1], [], []>} : vector<2x128xbf16>, vector<128x128xbf16>, vector<2x128xf32> -> vector<2x128xf32>
    %39 = vector.broadcast %36 : vector<1x128xf32> to vector<2x128xf32>
    %40 = arith.addf %38, %39 : vector<2x128xf32>
    %cst_32 = arith.constant 0.000000e+00 : f32
    %41 = vector.broadcast %cst_32 : f32 to vector<2x128xf32>
    %42 = arith.maximumf %40, %41 : vector<2x128xf32>
    %c0_33 = arith.constant 0 : index
    %c0_34 = arith.constant 0 : index
    %43 = vector.load %arg11[%c0_33, %c0_34] : memref<128x128xbf16, #tpu.memory_space<vmem>>, vector<128x128xbf16>
    %c0_35 = arith.constant 0 : index
    %c0_36 = arith.constant 0 : index
    %44 = vector.load %arg12[%c0_35, %c0_36] : memref<1x128xf32, #tpu.memory_space<vmem>>, vector<1x128xf32>
    %45 = arith.truncf %42 : vector<2x128xf32> to vector<2x128xbf16>
    %cst_37 = arith.constant dense<0.000000e+00> : vector<2x128xf32>
    %46 = tpu.matmul %45, %43, %cst_37 {dimension_numbers = #tpu.dot_dimension_numbers<[1], [0], [0], [1], [0, 0, 1, 1], [], []>} : vector<2x128xbf16>, vector<128x128xbf16>, vector<2x128xf32> -> vector<2x128xf32>
    %47 = vector.broadcast %44 : vector<1x128xf32> to vector<2x128xf32>
    %48 = arith.addf %46, %47 : vector<2x128xf32>
    %49 = vector.broadcast %1 : vector<1x128xf32> to vector<2x128xf32>
    %50 = arith.mulf %48, %49 : vector<2x128xf32>
    %51 = vector.broadcast %3 : vector<1x128xf32> to vector<2x128xf32>
    %52 = arith.addf %50, %51 : vector<2x128xf32>
    %cst_38 = arith.constant 0.000000e+00 : f32
    %53 = vector.broadcast %cst_38 : f32 to vector<2x128xf32>
    %54 = arith.maximumf %52, %53 : vector<2x128xf32>
    %55 = math.absf %52 : vector<2x128xf32>
    %cst_39 = arith.constant 0.000000e+00 : f32
    %56 = vector.broadcast %cst_39 : f32 to vector<2x128xf32>
    %57 = arith.subf %56, %55 : vector<2x128xf32>
    %58 = math.exp %57 : vector<2x128xf32>
    %cst_40 = arith.constant 1.000000e+00 : f32
    %59 = vector.broadcast %cst_40 : f32 to vector<2x128xf32>
    %60 = arith.addf %59, %58 : vector<2x128xf32>
    %61 = math.log %60 : vector<2x128xf32>
    %62 = arith.addf %54, %61 : vector<2x128xf32>
    %cst_41 = arith.constant 9.99999997E-7 : f32
    %63 = vector.broadcast %cst_41 : f32 to vector<2x128xf32>
    %64 = arith.addf %62, %63 : vector<2x128xf32>
    %c0_42 = arith.constant 0 : index
    %c0_43 = arith.constant 0 : index
    %c0_44 = arith.constant 0 : index
    %65 = vector.load %arg15[%c0_42, %c0_43, %c0_44] : memref<1x2x128xf32, #tpu.memory_space<vmem>>, vector<1x2x128xf32>
    %66 = vector.shape_cast %65 : vector<1x2x128xf32> to vector<2x128xf32>
    %67 = vector.shape_cast %64 : vector<2x128xf32> to vector<1x2x128xf32>
    tpu.vector_store %arg15[%c0_42, %c0_43, %c0_44], %67 {strides = array<i32>} : memref<1x2x128xf32, #tpu.memory_space<vmem>>, vector<1x2x128xf32>,
    return
  }
  func.func @transform_0(%arg0: i32) -> (i32, i32, i32) {
    %c0_i32 = arith.constant 0 : i32
    %c0_i32_0 = arith.constant 0 : i32
    %c0_i32_1 = arith.constant 0 : i32
    return %arg0, %c0_i32, %c0_i32_0 : i32, i32, i32
  }
  func.func @transform_1(%arg0: i32) -> (i32, i32, i32) {
    %c0_i32 = arith.constant 0 : i32
    %c0_i32_0 = arith.constant 0 : i32
    %c0_i32_1 = arith.constant 0 : i32
    return %arg0, %c0_i32, %c0_i32_0 : i32, i32, i32
  }
  func.func @transform_2(%arg0: i32) -> (i32, i32, i32) {
    %c0_i32 = arith.constant 0 : i32
    %c0_i32_0 = arith.constant 0 : i32
    %c0_i32_1 = arith.constant 0 : i32
    return %arg0, %c0_i32, %c0_i32_0 : i32, i32, i32
  }
  func.func @transform_3(%arg0: i32) -> (i32, i32, i32) {
    %c0_i32 = arith.constant 0 : i32
    %c0_i32_0 = arith.constant 0 : i32
    %c0_i32_1 = arith.constant 0 : i32
    return %arg0, %c0_i32, %c0_i32_0 : i32, i32, i32
  }
  func.func @transform_4(%arg0: i32) -> (i32, i32) {
    %c0_i32 = arith.constant 0 : i32
    %c0_i32_0 = arith.constant 0 : i32
    %c0_i32_1 = arith.constant 0 : i32
    return %c0_i32, %c0_i32_0 : i32, i32
  }
  func.func @transform_5(%arg0: i32) -> (i32, i32) {
    %c0_i32 = arith.constant 0 : i32
    %c0_i32_0 = arith.constant 0 : i32
    %c0_i32_1 = arith.constant 0 : i32
    return %c0_i32, %c0_i32_0 : i32, i32
  }
  func.func @transform_6(%arg0: i32) -> (i32, i32) {
    %c0_i32 = arith.constant 0 : i32
    %c0_i32_0 = arith.constant 0 : i32
    %c0_i32_1 = arith.constant 0 : i32
    return %c0_i32, %c0_i32_0 : i32, i32
  }
  func.func @transform_7(%arg0: i32) -> (i32, i32) {
    %c0_i32 = arith.constant 0 : i32
    %c0_i32_0 = arith.constant 0 : i32
    %c0_i32_1 = arith.constant 0 : i32
    return %c0_i32, %c0_i32_0 : i32, i32
  }
  func.func @transform_8(%arg0: i32) -> (i32, i32) {
    %c0_i32 = arith.constant 0 : i32
    %c0_i32_0 = arith.constant 0 : i32
    %c0_i32_1 = arith.constant 0 : i32
    return %c0_i32, %c0_i32_0 : i32, i32
  }
  func.func @transform_9(%arg0: i32) -> (i32, i32) {
    %c0_i32 = arith.constant 0 : i32
    %c0_i32_0 = arith.constant 0 : i32
    %c0_i32_1 = arith.constant 0 : i32
    return %c0_i32, %c0_i32_0 : i32, i32
  }
  func.func @transform_10(%arg0: i32) -> (i32, i32) {
    %c0_i32 = arith.constant 0 : i32
    %c0_i32_0 = arith.constant 0 : i32
    %c0_i32_1 = arith.constant 0 : i32
    return %c0_i32, %c0_i32_0 : i32, i32
  }
  func.func @transform_11(%arg0: i32) -> (i32, i32) {
    %c0_i32 = arith.constant 0 : i32
    %c0_i32_0 = arith.constant 0 : i32
    %c0_i32_1 = arith.constant 0 : i32
    return %c0_i32, %c0_i32_0 : i32, i32
  }
  func.func @transform_12(%arg0: i32) -> (i32, i32, i32) {
    %c0_i32 = arith.constant 0 : i32
    %c0_i32_0 = arith.constant 0 : i32
    %c0_i32_1 = arith.constant 0 : i32
    return %arg0, %c0_i32, %c0_i32_0 : i32, i32, i32
  }
  func.func @transform_13(%arg0: i32) -> (i32, i32, i32) {
    %c0_i32 = arith.constant 0 : i32
    %c0_i32_0 = arith.constant 0 : i32
    %c0_i32_1 = arith.constant 0 : i32
    return %arg0, %c0_i32, %c0_i32_0 : i32, i32, i32
  }
  func.func @transform_14(%arg0: i32) -> (i32, i32, i32) {
    %c0_i32 = arith.constant 0 : i32
    %c0_i32_0 = arith.constant 0 : i32
    %c0_i32_1 = arith.constant 0 : i32
    return %arg0, %c0_i32, %c0_i32_0 : i32, i32, i32
  }
}

module attributes {stable_mosaic.version = 11 : i64} {
  func.func @_encoder_kernel(%arg0: i32, %arg1: memref<1x4x128xf32, #tpu.memory_space<vmem>>, %arg2: memref<1x1x128xf32, #tpu.memory_space<vmem>>, %arg3: memref<1x1x128xf32, #tpu.memory_space<vmem>>, %arg4: memref<128x128xbf16, #tpu.memory_space<vmem>>, %arg5: memref<1x128xf32, #tpu.memory_space<vmem>>, %arg6: memref<128x128xbf16, #tpu.memory_space<vmem>>, %arg7: memref<1x128xf32, #tpu.memory_space<vmem>>, %arg8: memref<1x4x128xf32, #tpu.memory_space<vmem>>) attributes {dimension_semantics = [#tpu.dimension_semantics<parallel>], iteration_bounds = array<i64: 2>, scalar_prefetch = 0 : i64, scratch_operands = 0 : i64, tpu.core_type = #tpu.core_type<tc>, window_params = [{transform_indices = @transform_0, window_bounds = array<i64: 1, 4, 128>}, {transform_indices = @transform_1, window_bounds = array<i64: 1, 1, 128>}, {transform_indices = @transform_2, window_bounds = array<i64: 1, 1, 128>}, {pipeline_mode = #tpu.pipeline_mode<synchronous>, transform_indices = @transform_3, window_bounds = array<i64: 128, 128>}, {pipeline_mode = #tpu.pipeline_mode<synchronous>, transform_indices = @transform_4, window_bounds = array<i64: 1, 128>}, {pipeline_mode = #tpu.pipeline_mode<synchronous>, transform_indices = @transform_5, window_bounds = array<i64: 128, 128>}, {pipeline_mode = #tpu.pipeline_mode<synchronous>, transform_indices = @transform_6, window_bounds = array<i64: 1, 128>}, {transform_indices = @transform_7, window_bounds = array<i64: 1, 4, 128>}]} {
    %c0 = arith.constant 0 : index
    %c0_0 = arith.constant 0 : index
    %c0_1 = arith.constant 0 : index
    %0 = vector.load %arg1[%c0, %c0_0, %c0_1] : memref<1x4x128xf32, #tpu.memory_space<vmem>>, vector<1x4x128xf32>
    %1 = vector.shape_cast %0 : vector<1x4x128xf32> to vector<4x128xf32>
    %c0_2 = arith.constant 0 : index
    %c0_3 = arith.constant 0 : index
    %c0_4 = arith.constant 0 : index
    %2 = vector.load %arg2[%c0_2, %c0_3, %c0_4] : memref<1x1x128xf32, #tpu.memory_space<vmem>>, vector<1x1x128xf32>
    %3 = vector.shape_cast %2 : vector<1x1x128xf32> to vector<1x128xf32>
    %4 = vector.broadcast %3 : vector<1x128xf32> to vector<4x128xf32>
    %5 = arith.mulf %1, %4 : vector<4x128xf32>
    %c0_5 = arith.constant 0 : index
    %c0_6 = arith.constant 0 : index
    %c0_7 = arith.constant 0 : index
    %6 = vector.load %arg3[%c0_5, %c0_6, %c0_7] : memref<1x1x128xf32, #tpu.memory_space<vmem>>, vector<1x1x128xf32>
    %7 = vector.shape_cast %6 : vector<1x1x128xf32> to vector<1x128xf32>
    %8 = vector.broadcast %7 : vector<1x128xf32> to vector<4x128xf32>
    %9 = arith.addf %5, %8 : vector<4x128xf32>
    %c0_8 = arith.constant 0 : index
    %c0_9 = arith.constant 0 : index
    %10 = vector.load %arg4[%c0_8, %c0_9] : memref<128x128xbf16, #tpu.memory_space<vmem>>, vector<128x128xbf16>
    %c0_10 = arith.constant 0 : index
    %c0_11 = arith.constant 0 : index
    %11 = vector.load %arg5[%c0_10, %c0_11] : memref<1x128xf32, #tpu.memory_space<vmem>>, vector<1x128xf32>
    %12 = arith.truncf %9 : vector<4x128xf32> to vector<4x128xbf16>
    %cst = arith.constant dense<0.000000e+00> : vector<4x128xf32>
    %13 = tpu.matmul %12, %10, %cst {dimension_numbers = #tpu.dot_dimension_numbers<[1], [0], [0], [1], [0, 0, 1, 1], [], []>} : vector<4x128xbf16>, vector<128x128xbf16>, vector<4x128xf32> -> vector<4x128xf32>
    %14 = vector.broadcast %11 : vector<1x128xf32> to vector<4x128xf32>
    %15 = arith.addf %13, %14 : vector<4x128xf32>
    %cst_12 = arith.constant 0.000000e+00 : f32
    %16 = vector.broadcast %cst_12 : f32 to vector<4x128xf32>
    %17 = arith.maximumf %15, %16 : vector<4x128xf32>
    %c0_13 = arith.constant 0 : index
    %c0_14 = arith.constant 0 : index
    %18 = vector.load %arg6[%c0_13, %c0_14] : memref<128x128xbf16, #tpu.memory_space<vmem>>, vector<128x128xbf16>
    %c0_15 = arith.constant 0 : index
    %c0_16 = arith.constant 0 : index
    %19 = vector.load %arg7[%c0_15, %c0_16] : memref<1x128xf32, #tpu.memory_space<vmem>>, vector<1x128xf32>
    %20 = arith.truncf %17 : vector<4x128xf32> to vector<4x128xbf16>
    %cst_17 = arith.constant dense<0.000000e+00> : vector<4x128xf32>
    %21 = tpu.matmul %20, %18, %cst_17 {dimension_numbers = #tpu.dot_dimension_numbers<[1], [0], [0], [1], [0, 0, 1, 1], [], []>} : vector<4x128xbf16>, vector<128x128xbf16>, vector<4x128xf32> -> vector<4x128xf32>
    %22 = vector.broadcast %19 : vector<1x128xf32> to vector<4x128xf32>
    %23 = arith.addf %21, %22 : vector<4x128xf32>
    %c0_18 = arith.constant 0 : index
    %c0_19 = arith.constant 0 : index
    %c0_20 = arith.constant 0 : index
    %24 = vector.load %arg8[%c0_18, %c0_19, %c0_20] : memref<1x4x128xf32, #tpu.memory_space<vmem>>, vector<1x4x128xf32>
    %25 = vector.shape_cast %24 : vector<1x4x128xf32> to vector<4x128xf32>
    %26 = vector.shape_cast %23 : vector<4x128xf32> to vector<1x4x128xf32>
    tpu.vector_store %arg8[%c0_18, %c0_19, %c0_20], %26 {strides = array<i32>} : memref<1x4x128xf32, #tpu.memory_space<vmem>>, vector<1x4x128xf32>,
    return
  }
  func.func @transform_0(%arg0: i32) -> (i32, i32, i32) {
    %c0_i32 = arith.constant 0 : i32
    %c0_i32_0 = arith.constant 0 : i32
    %c0_i32_1 = arith.constant 0 : i32
    return %arg0, %c0_i32, %c0_i32_0 : i32, i32, i32
  }
  func.func @transform_1(%arg0: i32) -> (i32, i32, i32) {
    %c0_i32 = arith.constant 0 : i32
    %c0_i32_0 = arith.constant 0 : i32
    %c0_i32_1 = arith.constant 0 : i32
    return %arg0, %c0_i32, %c0_i32_0 : i32, i32, i32
  }
  func.func @transform_2(%arg0: i32) -> (i32, i32, i32) {
    %c0_i32 = arith.constant 0 : i32
    %c0_i32_0 = arith.constant 0 : i32
    %c0_i32_1 = arith.constant 0 : i32
    return %arg0, %c0_i32, %c0_i32_0 : i32, i32, i32
  }
  func.func @transform_3(%arg0: i32) -> (i32, i32) {
    %c0_i32 = arith.constant 0 : i32
    %c0_i32_0 = arith.constant 0 : i32
    %c0_i32_1 = arith.constant 0 : i32
    return %c0_i32, %c0_i32_0 : i32, i32
  }
  func.func @transform_4(%arg0: i32) -> (i32, i32) {
    %c0_i32 = arith.constant 0 : i32
    %c0_i32_0 = arith.constant 0 : i32
    %c0_i32_1 = arith.constant 0 : i32
    return %c0_i32, %c0_i32_0 : i32, i32
  }
  func.func @transform_5(%arg0: i32) -> (i32, i32) {
    %c0_i32 = arith.constant 0 : i32
    %c0_i32_0 = arith.constant 0 : i32
    %c0_i32_1 = arith.constant 0 : i32
    return %c0_i32, %c0_i32_0 : i32, i32
  }
  func.func @transform_6(%arg0: i32) -> (i32, i32) {
    %c0_i32 = arith.constant 0 : i32
    %c0_i32_0 = arith.constant 0 : i32
    %c0_i32_1 = arith.constant 0 : i32
    return %c0_i32, %c0_i32_0 : i32, i32
  }
  func.func @transform_7(%arg0: i32) -> (i32, i32, i32) {
    %c0_i32 = arith.constant 0 : i32
    %c0_i32_0 = arith.constant 0 : i32
    %c0_i32_1 = arith.constant 0 : i32
    return %arg0, %c0_i32, %c0_i32_0 : i32, i32, i32
  }
}

module attributes {stable_mosaic.version = 11 : i64} {
  func.func @_dynamics_kernel(%arg0: memref<2x4x128xf32, #tpu.memory_space<vmem>>, %arg1: memref<2x2x128xf32, #tpu.memory_space<vmem>>, %arg2: memref<128x128xf32, #tpu.memory_space<vmem>>, %arg3: memref<2x4xf32, #tpu.memory_space<vmem>>, %arg4: memref<1x128xf32, #tpu.memory_space<vmem>>, %arg5: memref<128x128xf32, #tpu.memory_space<vmem>>, %arg6: memref<1x128xf32, #tpu.memory_space<vmem>>, %arg7: memref<1x128xf32, #tpu.memory_space<vmem>>, %arg8: memref<1x128xf32, #tpu.memory_space<vmem>>, %arg9: memref<1x128xf32, #tpu.memory_space<vmem>>, %arg10: memref<1x128xf32, #tpu.memory_space<vmem>>, %arg11: memref<2x4x128xf32, #tpu.memory_space<vmem>>, %arg12: memref<2x2x384xf32, #tpu.memory_space<vmem>>) attributes {dimension_semantics = [], scalar_prefetch = 0 : i64, scratch_operands = 0 : i64, tpu.core_type = #tpu.core_type<tc>} {
    %c0 = arith.constant 0 : index
    %c0_0 = arith.constant 0 : index
    %c0_1 = arith.constant 0 : index
    %0 = vector.load %arg0[%c0, %c0_0, %c0_1] : memref<2x4x128xf32, #tpu.memory_space<vmem>>, vector<2x4x128xf32>
    %c0_2 = arith.constant 0 : index
    %c0_3 = arith.constant 0 : index
    %1 = vector.load %arg2[%c0_2, %c0_3] : memref<128x128xf32, #tpu.memory_space<vmem>>, vector<128x128xf32>
    %2 = vector.shape_cast %0 : vector<2x4x128xf32> to vector<8x128xf32>
    %cst = arith.constant dense<0.000000e+00> : vector<8x128xf32>
    %3 = tpu.matmul %2, %1, %cst {dimension_numbers = #tpu.dot_dimension_numbers<[1], [0], [0], [1], [0, 0, 1, 1], [], []>} : vector<8x128xf32>, vector<128x128xf32>, vector<8x128xf32> -> vector<8x128xf32>
    %4 = vector.shape_cast %3 : vector<8x128xf32> to vector<2x4x128xf32>
    %5 = vector.extract_strided_slice %0 {offsets = [0, 0, 0], sizes = [2, 1, 128], strides = [1, 1, 1]} : vector<2x4x128xf32> to vector<2x1x128xf32>
    %6 = vector.extract_strided_slice %4 {offsets = [0, 0, 0], sizes = [2, 3, 128], strides = [1, 1, 1]} : vector<2x4x128xf32> to vector<2x3x128xf32>
    %7 = tpu.concatenate %5, %6 in 1 : vector<2x1x128xf32>, vector<2x3x128xf32> -> vector<2x4x128xf32>
    %c0_4 = arith.constant 0 : index
    %c0_5 = arith.constant 0 : index
    %c0_6 = arith.constant 0 : index
    %8 = vector.load %arg11[%c0_4, %c0_5, %c0_6] : memref<2x4x128xf32, #tpu.memory_space<vmem>>, vector<2x4x128xf32>
    tpu.vector_store %arg11[%c0_4, %c0_5, %c0_6], %7 {strides = array<i32>} : memref<2x4x128xf32, #tpu.memory_space<vmem>>, vector<2x4x128xf32>,
    %9 = vector.extract_strided_slice %0 {offsets = [0, 1, 0], sizes = [2, 3, 128], strides = [1, 1, 1]} : vector<2x4x128xf32> to vector<2x3x128xf32>
    %10 = vector.extract_strided_slice %4 {offsets = [0, 0, 0], sizes = [2, 3, 128], strides = [1, 1, 1]} : vector<2x4x128xf32> to vector<2x3x128xf32>
    %11 = arith.subf %9, %10 : vector<2x3x128xf32>
    %c0_7 = arith.constant 0 : index
    %c0_8 = arith.constant 0 : index
    %12 = vector.load %arg3[%c0_7, %c0_8] : memref<2x4xf32, #tpu.memory_space<vmem>>, vector<2x4xf32>
    %13 = vector.extract_strided_slice %12 {offsets = [0, 1], sizes = [2, 3], strides = [1, 1]} : vector<2x4xf32> to vector<2x3xf32>
    %14 = vector.shape_cast %13 : vector<2x3xf32> to vector<1x2x3xf32>
    %15 = vector.shape_cast %14 : vector<1x2x3xf32> to vector<1x2x3xf32>
    %16 = vector.broadcast %15 : vector<1x2x3xf32> to vector<2x2x3xf32>
    "tpu.trace_start"() <{level = 10 : i32, message = "bsf,bfe->bse"}> : () -> ()
    %cst_9 = arith.constant dense<0.000000e+00> : vector<2x2x128xf32>
    %17 = tpu.matmul %16, %11, %cst_9 {dimension_numbers = #tpu.dot_dimension_numbers<[2], [1], [1], [2], [0, 0, 0, 1, 1, 2], [0], [0]>} : vector<2x2x3xf32>, vector<2x3x128xf32>, vector<2x2x128xf32> -> vector<2x2x128xf32>
    "tpu.trace_stop"() : () -> ()
    %c0_10 = arith.constant 0 : index
    %c0_11 = arith.constant 0 : index
    %18 = vector.load %arg4[%c0_10, %c0_11] : memref<1x128xf32, #tpu.memory_space<vmem>>, vector<1x128xf32>
    %19 = vector.shape_cast %18 : vector<1x128xf32> to vector<1x1x128xf32>
    %20 = vector.broadcast %19 : vector<1x1x128xf32> to vector<2x2x128xf32>
    %21 = arith.addf %17, %20 : vector<2x2x128xf32>
    %22 = vector.extract_strided_slice %0 {offsets = [0, 3, 0], sizes = [2, 1, 128], strides = [1, 1, 1]} : vector<2x4x128xf32> to vector<2x1x128xf32>
    %23 = vector.shape_cast %22 : vector<2x1x128xf32> to vector<2x128xf32>
    %cst_12 = arith.constant dense<0.000000e+00> : vector<128x128xf32>
    %24 = tpu.matmul %1, %1, %cst_12 {dimension_numbers = #tpu.dot_dimension_numbers<[1], [0], [0], [1], [0, 0, 1, 1], [], []>} : vector<128x128xf32>, vector<128x128xf32>, vector<128x128xf32> -> vector<128x128xf32>
    %25 = tpu.concatenate %1, %24 in 1 : vector<128x128xf32>, vector<128x128xf32> -> vector<128x256xf32>
    %cst_13 = arith.constant dense<0.000000e+00> : vector<2x256xf32>
    %26 = tpu.matmul %23, %25, %cst_13 {dimension_numbers = #tpu.dot_dimension_numbers<[1], [0], [0], [1], [0, 0, 1, 1], [], []>} : vector<2x128xf32>, vector<128x256xf32>, vector<2x256xf32> -> vector<2x256xf32>
    %c0_14 = arith.constant 0 : index
    %c0_15 = arith.constant 0 : index
    %27 = vector.load %arg5[%c0_14, %c0_15] : memref<128x128xf32, #tpu.memory_space<vmem>>, vector<128x128xf32>
    %c0_16 = arith.constant 0 : index
    %c0_17 = arith.constant 0 : index
    %28 = vector.load %arg6[%c0_16, %c0_17] : memref<1x128xf32, #tpu.memory_space<vmem>>, vector<1x128xf32>
    %29 = arith.mulf %28, %28 : vector<1x128xf32>
    %c0_18 = arith.constant 0 : index
    %c0_19 = arith.constant 0 : index
    %30 = vector.load %arg7[%c0_18, %c0_19] : memref<1x128xf32, #tpu.memory_space<vmem>>, vector<1x128xf32>
    %c0_20 = arith.constant 0 : index
    %c0_21 = arith.constant 0 : index
    %31 = vector.load %arg8[%c0_20, %c0_21] : memref<1x128xf32, #tpu.memory_space<vmem>>, vector<1x128xf32>
    %c0_22 = arith.constant 0 : index
    %c0_23 = arith.constant 0 : index
    %32 = vector.load %arg9[%c0_22, %c0_23] : memref<1x128xf32, #tpu.memory_space<vmem>>, vector<1x128xf32>
    %c0_24 = arith.constant 0 : index
    %c0_25 = arith.constant 0 : index
    %c0_26 = arith.constant 0 : index
    %33 = vector.load %arg1[%c0_24, %c0_25, %c0_26] : memref<2x2x128xf32, #tpu.memory_space<vmem>>, vector<2x2x128xf32>
    %c0_27 = arith.constant 0 : index
    %c0_28 = arith.constant 0 : index
    %34 = vector.load %arg10[%c0_27, %c0_28] : memref<1x128xf32, #tpu.memory_space<vmem>>, vector<1x128xf32>
    %35 = vector.shape_cast %34 : vector<1x128xf32> to vector<1x128xf32>
    %36 = vector.broadcast %35 : vector<1x128xf32> to vector<2x128xf32>
    %37 = vector.extract_strided_slice %26 {offsets = [0, 0], sizes = [2, 128], strides = [1, 1]} : vector<2x256xf32> to vector<2x128xf32>
    %cst_29 = arith.constant dense<0.000000e+00> : vector<2x128xf32>
    %38 = tpu.matmul %23, %27, %cst_29 {dimension_numbers = #tpu.dot_dimension_numbers<[1], [0], [0], [1], [0, 0, 1, 1], [], []>} : vector<2x128xf32>, vector<128x128xf32>, vector<2x128xf32> -> vector<2x128xf32>
    %39 = vector.broadcast %29 : vector<1x128xf32> to vector<2x128xf32>
    %40 = arith.mulf %39, %36 : vector<2x128xf32>
    %41 = vector.broadcast %31 : vector<1x128xf32> to vector<2x128xf32>
    %42 = arith.addf %40, %41 : vector<2x128xf32>
    %43 = vector.broadcast %30 : vector<1x128xf32> to vector<2x128xf32>
    %44 = arith.mulf %38, %43 : vector<2x128xf32>
    %45 = arith.subf %37, %44 : vector<2x128xf32>
    %46 = arith.mulf %30, %30 : vector<1x128xf32>
    %47 = vector.broadcast %46 : vector<1x128xf32> to vector<2x128xf32>
    %48 = arith.mulf %47, %42 : vector<2x128xf32>
    %49 = vector.broadcast %32 : vector<1x128xf32> to vector<2x128xf32>
    %50 = arith.addf %48, %49 : vector<2x128xf32>
    %51 = vector.broadcast %30 : vector<1x128xf32> to vector<2x128xf32>
    %52 = arith.mulf %42, %51 : vector<2x128xf32>
    %53 = arith.divf %52, %50 : vector<2x128xf32>
    %54 = arith.mulf %53, %45 : vector<2x128xf32>
    %55 = arith.addf %38, %54 : vector<2x128xf32>
    %56 = vector.broadcast %30 : vector<1x128xf32> to vector<2x128xf32>
    %57 = arith.mulf %53, %56 : vector<2x128xf32>
    %cst_30 = arith.constant 1.000000e+00 : f32
    %58 = vector.broadcast %cst_30 : f32 to vector<2x128xf32>
    %59 = arith.subf %58, %57 : vector<2x128xf32>
    %60 = arith.mulf %59, %42 : vector<2x128xf32>
    %61 = math.sqrt %60 : vector<2x128xf32>
    %62 = vector.extract_strided_slice %33 {offsets = [0, 0, 0], sizes = [2, 1, 128], strides = [1, 1, 1]} : vector<2x2x128xf32> to vector<2x1x128xf32>
    %63 = vector.shape_cast %62 : vector<2x1x128xf32> to vector<2x128xf32>
    %64 = arith.mulf %61, %63 : vector<2x128xf32>
    %65 = arith.addf %55, %64 : vector<2x128xf32>
    %66 = vector.extract_strided_slice %21 {offsets = [0, 0, 0], sizes = [2, 1, 128], strides = [1, 1, 1]} : vector<2x2x128xf32> to vector<2x1x128xf32>
    %67 = vector.shape_cast %66 : vector<2x1x128xf32> to vector<2x128xf32>
    %68 = arith.addf %55, %67 : vector<2x128xf32>
    %69 = arith.addf %68, %65 : vector<2x128xf32>
    %70 = vector.extract_strided_slice %26 {offsets = [0, 128], sizes = [2, 128], strides = [1, 1]} : vector<2x256xf32> to vector<2x128xf32>
    %cst_31 = arith.constant dense<0.000000e+00> : vector<2x128xf32>
    %71 = tpu.matmul %55, %27, %cst_31 {dimension_numbers = #tpu.dot_dimension_numbers<[1], [0], [0], [1], [0, 0, 1, 1], [], []>} : vector<2x128xf32>, vector<128x128xf32>, vector<2x128xf32> -> vector<2x128xf32>
    %72 = vector.broadcast %29 : vector<1x128xf32> to vector<2x128xf32>
    %73 = arith.mulf %72, %60 : vector<2x128xf32>
    %74 = vector.broadcast %31 : vector<1x128xf32> to vector<2x128xf32>
    %75 = arith.addf %73, %74 : vector<2x128xf32>
    %76 = vector.broadcast %30 : vector<1x128xf32> to vector<2x128xf32>
    %77 = arith.mulf %71, %76 : vector<2x128xf32>
    %78 = arith.subf %70, %77 : vector<2x128xf32>
    %79 = arith.mulf %30, %30 : vector<1x128xf32>
    %80 = vector.broadcast %79 : vector<1x128xf32> to vector<2x128xf32>
    %81 = arith.mulf %80, %75 : vector<2x128xf32>
    %82 = vector.broadcast %32 : vector<1x128xf32> to vector<2x128xf32>
    %83 = arith.addf %81, %82 : vector<2x128xf32>
    %84 = vector.broadcast %30 : vector<1x128xf32> to vector<2x128xf32>
    %85 = arith.mulf %75, %84 : vector<2x128xf32>
    %86 = arith.divf %85, %83 : vector<2x128xf32>
    %87 = arith.mulf %86, %78 : vector<2x128xf32>
    %88 = arith.addf %71, %87 : vector<2x128xf32>
    %89 = vector.broadcast %30 : vector<1x128xf32> to vector<2x128xf32>
    %90 = arith.mulf %86, %89 : vector<2x128xf32>
    %cst_32 = arith.constant 1.000000e+00 : f32
    %91 = vector.broadcast %cst_32 : f32 to vector<2x128xf32>
    %92 = arith.subf %91, %90 : vector<2x128xf32>
    %93 = arith.mulf %92, %75 : vector<2x128xf32>
    %94 = math.sqrt %93 : vector<2x128xf32>
    %95 = vector.extract_strided_slice %33 {offsets = [0, 1, 0], sizes = [2, 1, 128], strides = [1, 1, 1]} : vector<2x2x128xf32> to vector<2x1x128xf32>
    %96 = vector.shape_cast %95 : vector<2x1x128xf32> to vector<2x128xf32>
    %97 = arith.mulf %94, %96 : vector<2x128xf32>
    %98 = arith.addf %88, %97 : vector<2x128xf32>
    %99 = vector.extract_strided_slice %21 {offsets = [0, 1, 0], sizes = [2, 1, 128], strides = [1, 1, 1]} : vector<2x2x128xf32> to vector<2x1x128xf32>
    %100 = vector.shape_cast %99 : vector<2x1x128xf32> to vector<2x128xf32>
    %101 = arith.addf %88, %100 : vector<2x128xf32>
    %102 = arith.addf %101, %98 : vector<2x128xf32>
    %103 = vector.shape_cast %69 : vector<2x128xf32> to vector<2x1x128xf32>
    %104 = vector.shape_cast %102 : vector<2x128xf32> to vector<2x1x128xf32>
    %105 = tpu.concatenate %103, %104 in 1 : vector<2x1x128xf32>, vector<2x1x128xf32> -> vector<2x2x128xf32>
    %106 = vector.shape_cast %55 : vector<2x128xf32> to vector<2x1x128xf32>
    %107 = vector.shape_cast %88 : vector<2x128xf32> to vector<2x1x128xf32>
    %108 = tpu.concatenate %106, %107 in 1 : vector<2x1x128xf32>, vector<2x1x128xf32> -> vector<2x2x128xf32>
    %109 = vector.shape_cast %61 : vector<2x128xf32> to vector<2x1x128xf32>
    %110 = vector.shape_cast %94 : vector<2x128xf32> to vector<2x1x128xf32>
    %111 = tpu.concatenate %109, %110 in 1 : vector<2x1x128xf32>, vector<2x1x128xf32> -> vector<2x2x128xf32>
    %112 = tpu.concatenate %105, %108, %111 in 2 : vector<2x2x128xf32>, vector<2x2x128xf32>, vector<2x2x128xf32> -> vector<2x2x384xf32>
    %c0_33 = arith.constant 0 : index
    %c0_34 = arith.constant 0 : index
    %c0_35 = arith.constant 0 : index
    %113 = vector.load %arg12[%c0_33, %c0_34, %c0_35] : memref<2x2x384xf32, #tpu.memory_space<vmem>>, vector<2x2x384xf32>
    tpu.vector_store %arg12[%c0_33, %c0_34, %c0_35], %112 {strides = array<i32>} : memref<2x2x384xf32, #tpu.memory_space<vmem>>, vector<2x2x384xf32>,
    return
  }
}

</mosaic_0001>

<bundles_post_ra>
// kernel: tile.24
= control target key start
LH: loop header
LB: loop body
LE: loop exit
PB: predicated region body
PF: predicated region fallthrough
CT: control target
= control target key end

     0   :  { %s7_s6 = smov 3  ;;  %s21_s9 = smov 3  ;;  %vm4_vm0 = vcmask 31744   ;;  %vm11_vm1 = vcmask 261344   ;;  %vm18_vm2 = vcmask 228544   ;;  %vm25_vm3 = vcmask 195744   ;;  %s119_s0 = inlined_call_operand.vmem [shape: f32[2,8,4], index: 0, kind: input, shape index: {}]   ;;  %s120_s1 = inlined_call_operand.vmem [shape: f32[2,32], index: 1, kind: output, shape index: {}]  }
   0x1   :  { %v61_v0 = vld [vmem:[%s119_s0 + $0x7] ss:$8 sm:%s7_s6]   ;;  %s75_s10 = smov 28   ;;  %v63_v1 = vld [vmem:[%s119_s0 + $0x5] ss:$8 sm:%s21_s9]   ;;  %s14_s13 = smov 3 }
   0x2   :  { %9 = vrot.lane.b32.xlu0 %v61_v0, %s75_s10  ;;  %s76_s14 = smov 20   ;;  %v62_v2 = vld [vmem:[%s119_s0 + $0x6] ss:$8 sm:%s14_s13]   ;;  %s28_s17 = smov 3  ;;  %vm32_vm4 = vcmask 162944   ;;  %vm39_vm5 = vcmask 130144  }
   0x3   :  { %23 = vrot.lane.b32.xlu1 %v63_v1, %s76_s14  ;;  %v64_v3 = vld [vmem:[%s119_s0 + $0x4] ss:$8 sm:%s28_s17]   ;;  %s35_s20 = smov 3  ;;  %s42_s21 = smov 3  ;;  %vm46_vm6 = vcmask 97344   ;;  %vm53_vm7 = vcmask 64544  }
   0x4   :  { %s77_s22 = smov 24   ;;  %s78_s23 = smov 16   ;;  %v65_v4 = vld [vmem:[%s119_s0 + $0x3] ss:$8 sm:%s35_s20]   ;;  %v66_v5 = vld [vmem:[%s119_s0 + $0x2] ss:$8 sm:%s42_s21]  }
   0x5   :  { %s2_s26 = smov 3  ;;  %s49_s29 = smov 3 }
   0x6   :  { %16 = vrot.lane.b32.xlu0 %v62_v2, %s77_s22  ;;  %v3_v6 = vld [vmem:[%s119_s0] ss:$8 sm:%s2_s26]   ;;  %s79_s3 = smov 12   ;;  %s80_s4 = smov 8  }
   0x7   :  { %30 = vrot.lane.b32.xlu1 %v64_v3, %s78_s23  ;;  %5 = vst.msk [vmem:[#allocation0] sm:$0x3] %vm4_vm0, %v3_v6   ;;  %v67_v7 = vld [vmem:[%s119_s0 + $0x1] ss:$8 sm:%s49_s29]   ;;  %s81_s0 = smov 4  }
   0xa   :  { %37 = vrot.lane.b32.xlu0 %v65_v4, %s79_s3 }
   0xb   :  { %44 = vrot.lane.b32.xlu1 %v66_v5, %s80_s4 }
   0xe   :  { %51 = vrot.lane.b32.xlu0 %v67_v7, %s81_s0 }
  0x74   :  { %v10_v8 = vpop.permute.xlu0 %9  }
  0x75   :  { %12 = vst.msk [vmem:[#allocation0] sm:$0x3] %vm11_vm1, %v10_v8   ;;  %v24_v9 = vpop.permute.xlu1 %23  }
  0x78   :  { %v17_v10 = vpop.permute.xlu0 %16  }
  0x79   :  { %19 = vst.msk [vmem:[#allocation0] sm:$0x3] %vm18_vm2, %v17_v10   ;;  %v31_v11 = vpop.permute.xlu1 %30  }
  0x7a   :  { %26 = vst.msk [vmem:[#allocation0] sm:$0x3] %vm25_vm3, %v24_v9  }
  0x7b   :  { %33 = vst.msk [vmem:[#allocation0] sm:$0x3] %vm32_vm4, %v31_v11  }
  0x7c   :  { %v38_v12 = vpop.permute.xlu0 %37  }
  0x7d   :  { %40 = vst.msk [vmem:[#allocation0] sm:$0x3] %vm39_vm5, %v38_v12   ;;  %v45_v13 = vpop.permute.xlu1 %44  }
  0x7e   :  { %47 = vst.msk [vmem:[#allocation0] sm:$0x3] %vm46_vm6, %v45_v13  }
  0x80   :  { %v52_v14 = vpop.permute.xlu0 %51  }
  0x81   :  { %54 = vst.msk [vmem:[#allocation0] sm:$0x3] %vm53_vm7, %v52_v14  }
  0x88   :  { %v58_v15 = vld [vmem:[#allocation0] sm:$0x3] }
  0x89   :  { %60 = vst [vmem:[%s120_s1] sm:$0x3] %v58_v15 }

// kernel: k2vae_forward.3
= control target key start
LH: loop header
LB: loop body
LE: loop exit
PB: predicated region body
PF: predicated region fallthrough
CT: control target
= control target key end

     0   :  { %s780_s24 = smov 0   ;;  %s866_s0 = inlined_call_operand.vmem [shape: f32[2,4,128], index: 0, kind: input, shape index: {}]   ;;  %s867_s1 = inlined_call_operand.vmem [shape: f32[2,1,128], index: 1, kind: input, shape index: {}]   ;;  %s868_s2 = inlined_call_operand.vmem [shape: f32[2,1,128], index: 2, kind: input, shape index: {}]   ;;  %s869_s3 = inlined_call_operand.vmem [shape: bf16[128,128], index: 3, kind: input, shape index: {}]   ;;  %s870_s4 = inlined_call_operand.vmem [shape: f32[1,128], index: 4, kind: input, shape index: {}]   ;;  %s871_s5 = inlined_call_operand.vmem [shape: bf16[128,128], index: 5, kind: input, shape index: {}]   ;;  %s872_s6 = inlined_call_operand.vmem [shape: f32[1,128], index: 6, kind: input, shape index: {}]   ;;  %s873_s7 = inlined_call_operand.vmem [shape: f32[2,4,128], index: 7, kind: output, shape index: {}]  }
   0x1 LB: > { %s617_s25 = sadd.s32 4294967295, %s736_s24   ;;  %p621_p0 = scmp.ge.s32.totalorder %s736_s24, 1  ;;  %s736_s24 = sphi %s780_s24, %s17_s24  }
   0x2   : > { %p252_p1 = scmp.lt.s32.totalorder %s736_s24, 3 }
   0x4   : > { %p253_p2 = pnand %p621_p0, %p252_p1 }
   0x5   : > { %v714_v0 = vld [vmem:[%s869_s3] sm:$0xff] (!%p253_p2)   ;;  %v738_v1 = vmov (!%p253_p2), 0.0   ;;  %v715_v2 = vld [vmem:[%s869_s3 + $0x8] sm:$0xff] (!%p253_p2)   ;;  %vm739_vm0 = vmmov (!%p253_p2), 0   ;;  %p288_p3 = scmp.lt.s32.totalorder (!%p253_p2), %s617_s25, 1  ;;  %v716_v3 = vld [vmem:[%s869_s3 + $0x10] sm:$0xff] (!%p253_p2)  }
   0x6   : > { %256 = sbr.rel (%p253_p2) target bundleno = 471 (0x1d7), region = 48  ;;  %664 = vmatprep.subr.bf16.mxu0 (!%p253_p2), %v738_v1  ;;  %684 = vmatprep.subr.bf16.mxu1 (!%p253_p2), %v738_v1  ;;  %v722_v4 = vld [vmem:[%s871_s5] sm:$0xff] (!%p253_p2)   ;;  %v717_v5 = vld [vmem:[%s869_s3 + $0x18] sm:$0xff] (!%p253_p2)   ;;  %v723_v6 = vld [vmem:[%s871_s5 + $0x8] sm:$0xff] (!%p253_p2)  }
   0x7   : > { %665 = vmatpush3.bf16.msra.mxu0 (!%p253_p2), %v714_v0  ;;  %680 = vmatprep.mubr.msk.bf16.mxu0 (!%p253_p2), %vm739_vm0, %v738_v1  ;;  %v718_v7 = vld [vmem:[%s869_s3 + $0x20] sm:$0xff] (!%p253_p2)   ;;  %v724_v8 = vld [vmem:[%s871_s5 + $0x10] sm:$0xff] (!%p253_p2)   ;;  %v719_v9 = vld [vmem:[%s869_s3 + $0x28] sm:$0xff] (!%p253_p2)  }
   0x8   : > { %666 = vmatprep.subr.bf16.mxu0 (!%p253_p2), %v738_v1  ;;  %700 = vmatprep.mubr.msk.bf16.mxu1 (!%p253_p2), %vm739_vm0, %v738_v1  ;;  %v725_v12 = vld [vmem:[%s871_s5 + $0x18] sm:$0xff] (!%p253_p2)   ;;  %v720_v14 = vld [vmem:[%s869_s3 + $0x30] sm:$0xff] (!%p253_p2)   ;;  %v726_v16 = vld [vmem:[%s871_s5 + $0x20] sm:$0xff] (!%p253_p2)  }
   0x9   : > { %685 = vmatpush3.bf16.msra.mxu1 (!%p253_p2), %v722_v4  ;;  %v721_v18 = vld [vmem:[%s869_s3 + $0x38] sm:$0xff] (!%p253_p2)   ;;  %v727_v19 = vld [vmem:[%s871_s5 + $0x28] sm:$0xff] (!%p253_p2)   ;;  %v728_v21 = vld [vmem:[%s871_s5 + $0x30] sm:$0xff] (!%p253_p2)  }
   0xa   : > { %686 = vmatprep.subr.bf16.mxu1 (!%p253_p2), %v738_v1  ;;  %v729_v22 = vld [vmem:[%s871_s5 + $0x38] sm:$0xff] (!%p253_p2)   ;;  %v626_v23 = vld [vmem:[%s870_s4] ss:$0 sm:$0xff] (!%p253_p2) }
   0xb   : > { %667 = vmatpush3.bf16.msra.mxu0 (!%p253_p2), %v715_v2  ;;  %v635_v31 = vld [vmem:[%s872_s6] ss:$0 sm:$0xff] (!%p253_p2) }
   0xc   : > { %668 = vmatprep.subr.bf16.mxu0 (!%p253_p2), %v738_v1 }
   0xd   : > { %s875_s25 = smov (!%p288_p3, %s617_s25), 1  ;;  %687 = vmatpush3.bf16.msra.mxu1 %v723_v6 }
   0xe   : > { %s622_s15 = sshll.u32 %s875_s25, 2  ;;  %s294_s23 = scalar_lea.vmem %s867_s1, %s875_s25  ;;  %688 = vmatprep.subr.bf16.mxu1 %v738_v1 }
   0xf   : > { %669 = vmatpush3.bf16.msra.mxu0 %v716_v3  ;;  %s291_s20 = scalar_lea.vmem %s866_s0, %s622_s15  ;;  %v624_v11 = vld [vmem:[%s294_s23] ss:$0 sm:$0xff]  ;;  %s297_s9 = scalar_lea.vmem %s868_s2, %s875_s25 }
  0x10   : > { %670 = vmatprep.subr.bf16.mxu0 %v738_v1  ;;  %v303_v10 = vld [vmem:[%s291_s20] sm:$0xf]  ;;  %s301_s10 = scalar_lea.vmem %s873_s7, %s622_s15 }
  0x11   : > { %689 = vmatpush3.bf16.msra.mxu1 %v724_v8  ;;  %v311_v13 = vmul.f32 %v624_v11, %v303_v10  ;;  %v625_v15 = vld [vmem:[%s297_s9] ss:$0 sm:$0xff] }
  0x12   : > { %690 = vmatprep.subr.bf16.mxu1 %v738_v1 }
  0x13   : > { %671 = vmatpush3.bf16.msra.mxu0 %v717_v5  ;;  %v319_v17 = vadd.f32 %v625_v15, %v311_v13 }
  0x14   : > { %672 = vmatprep.subr.bf16.mxu0 %v738_v1 }
  0x15   : > { %691 = vmatpush3.bf16.msra.mxu1 %v725_v12  ;;  %v337_v20 = vpack.c.bf16 %v319_v17, %v319_v17 }
  0x16   : > { %692 = vmatprep.subr.bf16.mxu1 %v738_v1 }
  0x17   : > { %673 = vmatpush3.bf16.msra.mxu0 %v718_v7 }
  0x18   : > { %674 = vmatprep.subr.bf16.mxu0 %v738_v1 }
  0x19   : > { %693 = vmatpush3.bf16.msra.mxu1 %v726_v16 }
  0x1a   : > { %694 = vmatprep.subr.bf16.mxu1 %v738_v1 }
  0x1b   : > { %675 = vmatpush3.bf16.msra.mxu0 %v719_v9 }
  0x1c   : > { %676 = vmatprep.subr.bf16.mxu0 %v738_v1 }
  0x1d   : > { %695 = vmatpush3.bf16.msra.mxu1 %v727_v19 }
  0x1e   : > { %696 = vmatprep.subr.bf16.mxu1 %v738_v1 }
  0x1f   : > { %677 = vmatpush3.bf16.msra.mxu0 %v720_v14 }
  0x20   : > { %678 = vmatprep.subr.bf16.mxu0 %v738_v1 }
  0x21   : > { %697 = vmatpush3.bf16.msra.mxu1 %v728_v21 }
  0x22   : > { %698 = vmatprep.subr.bf16.mxu1 %v738_v1 }
  0x23   : > { %679 = vmatpush3.bf16.msra.mxu0 %v721_v18 }
  0x25   : > { %699 = vmatpush3.bf16.msra.mxu1 %v729_v22 }
  0x26   : > { %681 = vmatmul.mubr.bf16.vlgmr.msra.gmra.mrb[0].mxu0 %v337_v20 }
  0xf9   : > { %v426_v24 = vpop.f32.mrb[0].mxu0 }
  0xfa   : > { %v427_v25 = vadd.f32 %v626_v23, %v426_v24  ;;  %v682_v26 = vpop.f32.mrb[1].mxu0 }
  0xfb   : > { %v429_v27 = vpop.f32.mrb[2].mxu0 }
  0xfc   : > { %v432_v28 = vmax.f32 %v427_v25, 0.0  ;;  %v683_v29 = vpop.f32.mrb[3].mxu0 }
  0xfe   : > { %v450_v30 = vpack.c.bf16 %v432_v28, %v432_v28 }
 0x100   : > { %701 = vmatmul.mubr.bf16.vlgmr.msra.gmra.mrb[0].mxu1 %v450_v30 }
 0x1d3   : > { %v539_v32 = vpop.f32.mrb[0].mxu1 }
 0x1d4   : > { %v540_v33 = vadd.f32 %v635_v31, %v539_v32  ;;  %v702_v34 = vpop.f32.mrb[1].mxu1 }
 0x1d5   : > { %v542_v35 = vpop.f32.mrb[2].mxu1 }
 0x1d6   : > { %545 = vst [vmem:[%s301_s10] sm:$0xf] %v540_v33  ;;  %v703_v36 = vpop.f32.mrb[3].mxu1 }
 0x1d7 PF: > { %s17_s24 = sadd.s32 1, %s736_s24  }
 0x1d8   : > { %p14_p4 = scmp.ge.s32.totalorder %s17_s24, 4  }
 0x1da   :  { %16 = sbr.rel (!%p14_p4) target bundleno = 1 (0x1), region = 84 }

// kernel: k2vae_forward.5
= control target key start
LH: loop header
LB: loop body
LE: loop exit
PB: predicated region body
PF: predicated region fallthrough
CT: control target
= control target key end

     0   :  { %s1460_s29 = smov 0   ;;  %s1655_s0 = inlined_call_operand.vmem [shape: f32[2,4,128], index: 0, kind: input, shape index: {}]   ;;  %s1656_s1 = inlined_call_operand.vmem [shape: f32[2,2,128], index: 1, kind: input, shape index: {}]   ;;  %s1657_s2 = inlined_call_operand.vmem [shape: f32[2,1,128], index: 2, kind: input, shape index: {}]   ;;  %s1658_s3 = inlined_call_operand.vmem [shape: f32[2,1,128], index: 3, kind: input, shape index: {}]   ;;  %s1659_s4 = inlined_call_operand.vmem [shape: bf16[128,128], index: 4, kind: input, shape index: {}]   ;;  %s1660_s5 = inlined_call_operand.vmem [shape: f32[1,128], index: 5, kind: input, shape index: {}]   ;;  %s1661_s6 = inlined_call_operand.vmem [shape: bf16[128,128], index: 6, kind: input, shape index: {}]   ;;  %s1662_s7 = inlined_call_operand.vmem [shape: f32[1,128], index: 7, kind: input, shape index: {}]   ;;  %s1663_s8 = inlined_call_operand.vmem [shape: bf16[128,128], index: 8, kind: input, shape index: {}]   ;;  %s1664_s9 = inlined_call_operand.vmem [shape: f32[1,128], index: 9, kind: input, shape index: {}]   ;;  %s1665_s10 = inlined_call_operand.vmem [shape: bf16[128,128], index: 10, kind: input, shape index: {}]   ;;  %s1666_s11 = inlined_call_operand.vmem [shape: f32[1,128], index: 11, kind: input, shape index: {}]   ;;  %s1667_s12 = inlined_call_operand.vmem [shape: f32[2,4,128], index: 12, kind: output, shape index: {0}]   ;;  %s1668_s13 = inlined_call_operand.vmem [shape: f32[2,2,128], index: 13, kind: output, shape index: {1}]   ;;  %s1669_s14 = inlined_call_operand.vmem [shape: f32[2,2,128], index: 14, kind: output, shape index: {2}]  }
   0x1 LB: > { %s1163_s30 = sadd.s32 4294967295, %s1381_s29   ;;  %p1167_p0 = scmp.ge.s32.totalorder %s1381_s29, 1  ;;  %s1381_s29 = sphi %s1460_s29, %s25_s29  }
   0x2   : > { %p441_p1 = scmp.lt.s32.totalorder %s1381_s29, 3 }
   0x4   : > { %p442_p2 = pnand %p1167_p0, %p441_p1 }
   0x5   : > { %v1339_v0 = vld [vmem:[%s1659_s4] sm:$0xff] (!%p442_p2)   ;;  %v1383_v1 = vmov (!%p442_p2), 0.0   ;;  %v1340_v2 = vld [vmem:[%s1659_s4 + $0x8] sm:$0xff] (!%p442_p2)   ;;  %vm1384_vm0 = vmmov (!%p442_p2), 0   ;;  %p503_p3 = scmp.lt.s32.totalorder (!%p442_p2), %s1163_s30, 1  ;;  %v1341_v3 = vld [vmem:[%s1659_s4 + $0x10] sm:$0xff] (!%p442_p2)  }
   0x6   : > { %445 = sbr.rel (%p442_p2) target bundleno = 543 (0x21f), region = 68  ;;  %1249 = vmatprep.subr.bf16.mxu0 (!%p442_p2), %v1383_v1  ;;  %1269 = vmatprep.subr.bf16.mxu1 (!%p442_p2), %v1383_v1  ;;  %v1342_v4 = vld [vmem:[%s1659_s4 + $0x18] sm:$0xff] (!%p442_p2)   ;;  %v1343_v5 = vld [vmem:[%s1659_s4 + $0x20] sm:$0xff] (!%p442_p2)   ;;  %v1344_v6 = vld [vmem:[%s1659_s4 + $0x28] sm:$0xff] (!%p442_p2)   ;;  %vm537_vm1 = vcmask (!%p442_p2), 1043456  }
   0x7   : > { %1250 = vmatpush3.bf16.msra.mxu0 (!%p442_p2), %v1339_v0  ;;  %1265 = vmatprep.mubr.msk.bf16.mxu0 (!%p442_p2), %vm1384_vm0, %v1383_v1  ;;  %v1355_v7 = vld [vmem:[%s1661_s6] sm:$0xff] (!%p442_p2)   ;;  %v1356_v9 = vld [vmem:[%s1661_s6 + $0x8] sm:$0xff] (!%p442_p2)   ;;  %v1345_v10 = vld [vmem:[%s1659_s4 + $0x30] sm:$0xff] (!%p442_p2)  }
   0x8   : > { %1251 = vmatprep.subr.bf16.mxu0 (!%p442_p2), %v1383_v1  ;;  %1285 = vmatprep.mubr.msk.bf16.mxu1 (!%p442_p2), %vm1384_vm0, %v1383_v1  ;;  %v1357_v13 = vld [vmem:[%s1661_s6 + $0x10] sm:$0xff] (!%p442_p2)   ;;  %v1346_v14 = vld [vmem:[%s1659_s4 + $0x38] sm:$0xff] (!%p442_p2)   ;;  %v1347_v18 = vld [vmem:[%s1663_s8] sm:$0xff] (!%p442_p2)  }
   0x9   : > { %1270 = vmatpush3.bf16.msra.mxu1 (!%p442_p2), %v1355_v7  ;;  %v1358_v15 = vld [vmem:[%s1661_s6 + $0x18] sm:$0xff] (!%p442_p2)   ;;  %v1359_v19 = vld [vmem:[%s1661_s6 + $0x20] sm:$0xff] (!%p442_p2)   ;;  %v1348_v20 = vld [vmem:[%s1663_s8 + $0x8] sm:$0xff] (!%p442_p2)  }
   0xa   : > { %1271 = vmatprep.subr.bf16.mxu1 (!%p442_p2), %v1383_v1  ;;  %v1360_v21 = vld [vmem:[%s1661_s6 + $0x28] sm:$0xff] (!%p442_p2)   ;;  %v1349_v22 = vld [vmem:[%s1663_s8 + $0x10] sm:$0xff] (!%p442_p2)   ;;  %v1350_v23 = vld [vmem:[%s1663_s8 + $0x18] sm:$0xff] (!%p442_p2)  }
   0xb   : > { %1252 = vmatpush3.bf16.msra.mxu0 (!%p442_p2), %v1340_v2  ;;  %v1351_v24 = vld [vmem:[%s1663_s8 + $0x20] sm:$0xff] (!%p442_p2)   ;;  %v1352_v25 = vld [vmem:[%s1663_s8 + $0x28] sm:$0xff] (!%p442_p2)   ;;  %v1353_v26 = vld [vmem:[%s1663_s8 + $0x30] sm:$0xff] (!%p442_p2)  }
   0xc   : > { %1253 = vmatprep.subr.bf16.mxu0 (!%p442_p2), %v1383_v1  ;;  %v1354_v27 = vld [vmem:[%s1663_s8 + $0x38] sm:$0xff] (!%p442_p2)   ;;  %v1361_v29 = vld [vmem:[%s1661_s6 + $0x30] sm:$0xff] (!%p442_p2)   ;;  %v1173_v31 = vld [vmem:[%s1660_s5] ss:$0 sm:$0xff] (!%p442_p2) }
   0xd   : > { %s1671_s30 = smov (!%p503_p3, %s1163_s30), 1  ;;  %1272 = vmatpush3.bf16.msra.mxu1 %v1356_v9  ;;  %v1362_v30 = vld [vmem:[%s1661_s6 + $0x38] sm:$0xff]   ;;  %v1363_v38 = vld [vmem:[%s1665_s10] sm:$0xff]   ;;  %v1364_v40 = vld [vmem:[%s1665_s10 + $0x8] sm:$0xff]  }
   0xe   : > { %s1492_s23 = sshll.u32 %s1671_s30, 1  ;;  %s1168_s17 = sshll.u32 %s1671_s30, 2  ;;  %1273 = vmatprep.subr.bf16.mxu1 %v1383_v1  ;;  %v1365_v41 = vld [vmem:[%s1665_s10 + $0x10] sm:$0xff]   ;;  %v1366_v42 = vld [vmem:[%s1665_s10 + $0x18] sm:$0xff]   ;;  %v1367_v43 = vld [vmem:[%s1665_s10 + $0x20] sm:$0xff]  }
   0xf   : > { %1254 = vmatpush3.bf16.msra.mxu0 %v1341_v3  ;;  %s510_s28 = scalar_lea.vmem %s1656_s1, %s1492_s23  ;;  %s506_s22 = scalar_lea.vmem %s1655_s0, %s1168_s17  ;;  %v1368_v44 = vld [vmem:[%s1665_s10 + $0x28] sm:$0xff]   ;;  %v1369_v45 = vld [vmem:[%s1665_s10 + $0x30] sm:$0xff]   ;;  %v1193_v46 = vld [vmem:[%s1664_s9] ss:$0 sm:$0xff] }
  0x10   : > { %1255 = vmatprep.subr.bf16.mxu0 %v1383_v1  ;;  %v533_v8 = vld [vmem:[%s510_s28] sm:$0x3]  ;;  %v1370_v48 = vld [vmem:[%s1665_s10 + $0x38] sm:$0xff]   ;;  %s513_s19 = scalar_lea.vmem %s1657_s2, %s1671_s30  ;;  %s516_s25 = scalar_lea.vmem %s1658_s3, %s1671_s30 }
  0x11   : > { %v532_v11 = vld [vmem:[%s506_s22] sm:$0xf]  ;;  %v535_v12 = vrot.slane %v533_v8, 4  ;;  %1274 = vmatpush3.bf16.msra.mxu1 %v1357_v13  ;;  %v797_v28 = vpack.c.bf16 %v533_v8, %v533_v8  ;;  %s520_s28 = scalar_lea.vmem %s1667_s12, %s1168_s17  ;;  %s524_s18 = scalar_lea.vmem %s1668_s13, %s1492_s23 }
  0x12   : > { %1275 = vmatprep.subr.bf16.mxu1 %v1383_v1  ;;  %v1182_v55 = vld [vmem:[%s1662_s7] ss:$0 sm:$0xff]  ;;  %s528_s21 = scalar_lea.vmem %s1669_s14, %s1492_s23 }
  0x13   : > { %1256 = vmatpush3.bf16.msra.mxu0 %v1342_v4  ;;  %v538_v16 = vsel %vm537_vm1, %v532_v11, %v535_v12  ;;  %v1191_v56 = vld [vmem:[%s513_s19] ss:$0 sm:$0xff] }
  0x14   : > { %1257 = vmatprep.subr.bf16.mxu0 %v1383_v1  ;;  %v556_v17 = vpack.c.bf16 %v538_v16, %v538_v16  ;;  %v1192_v60 = vld [vmem:[%s516_s25] ss:$0 sm:$0xff] }
  0x15   : > { %1276 = vmatpush3.bf16.msra.mxu1 %v1358_v15 }
  0x16   : > { %1277 = vmatprep.subr.bf16.mxu1 %v1383_v1 }
  0x17   : > { %1258 = vmatpush3.bf16.msra.mxu0 %v1343_v5 }
  0x18   : > { %1259 = vmatprep.subr.bf16.mxu0 %v1383_v1 }
  0x19   : > { %1278 = vmatpush3.bf16.msra.mxu1 %v1359_v19 }
  0x1a   : > { %1279 = vmatprep.subr.bf16.mxu1 %v1383_v1 }
  0x1b   : > { %1260 = vmatpush3.bf16.msra.mxu0 %v1344_v6 }
  0x1c   : > { %1261 = vmatprep.subr.bf16.mxu0 %v1383_v1 }
  0x1d   : > { %1280 = vmatpush3.bf16.msra.mxu1 %v1360_v21 }
  0x1e   : > { %1281 = vmatprep.subr.bf16.mxu1 %v1383_v1 }
  0x1f   : > { %1262 = vmatpush3.bf16.msra.mxu0 %v1345_v10 }
  0x20   : > { %1263 = vmatprep.subr.bf16.mxu0 %v1383_v1 }
  0x21   : > { %1282 = vmatpush3.bf16.msra.mxu1 %v1361_v29 }
  0x22   : > { %1283 = vmatprep.subr.bf16.mxu1 %v1383_v1 }
  0x23   : > { %1264 = vmatpush3.bf16.msra.mxu0 %v1346_v14 }
  0x24   : > { %1289 = vmatprep.subr.bf16.mxu0 %v1383_v1 }
  0x25   : > { %1284 = vmatpush3.bf16.msra.mxu1 %v1362_v30 }
  0x26   : > { %1266 = vmatmul.mubr.bf16.vlgmr.msra.gmra.mrb[0].mxu0 %v556_v17  ;;  %1309 = vmatprep.subr.bf16.mxu1 %v1383_v1 }
  0x27   : > { %1290 = vmatpush3.bf16.msra.mxu0 %v1347_v18  ;;  %1305 = vmatprep.mubr.msk.bf16.mxu0 %vm1384_vm0, %v1383_v1 }
  0x28   : > { %1291 = vmatprep.subr.bf16.mxu0 %v1383_v1 }
  0x2b   : > { %1292 = vmatpush3.bf16.msra.mxu0 %v1348_v20 }
  0x2c   : > { %1293 = vmatprep.subr.bf16.mxu0 %v1383_v1 }
  0x2f   : > { %1294 = vmatpush3.bf16.msra.mxu0 %v1349_v22 }
  0x30   : > { %1295 = vmatprep.subr.bf16.mxu0 %v1383_v1 }
  0x33   : > { %1296 = vmatpush3.bf16.msra.mxu0 %v1350_v23 }
  0x34   : > { %1297 = vmatprep.subr.bf16.mxu0 %v1383_v1 }
  0x37   : > { %1298 = vmatpush3.bf16.msra.mxu0 %v1351_v24 }
  0x38   : > { %1299 = vmatprep.subr.bf16.mxu0 %v1383_v1 }
  0x3b   : > { %1300 = vmatpush3.bf16.msra.mxu0 %v1352_v25 }
  0x3c   : > { %1301 = vmatprep.subr.bf16.mxu0 %v1383_v1 }
  0x3f   : > { %1302 = vmatpush3.bf16.msra.mxu0 %v1353_v26 }
  0x40   : > { %1303 = vmatprep.subr.bf16.mxu0 %v1383_v1 }
  0x43   : > { %1304 = vmatpush3.bf16.msra.mxu0 %v1354_v27 }
  0x46   : > { %1306 = vmatmul.mubr.bf16.vlgmr.msra.gmra.mrb[4].mxu0 %v797_v28 }
  0xf9   : > { %v645_v32 = vpop.f32.mrb[0].mxu0 }
  0xfa   : > { %v646_v33 = vadd.f32 %v1173_v31, %v645_v32  ;;  %v1267_v34 = vpop.f32.mrb[1].mxu0 }
  0xfb   : > { %v648_v35 = vpop.f32.mrb[2].mxu0 }
  0xfc   : > { %v651_v36 = vmax.f32 %v646_v33, 0.0  ;;  %v1268_v37 = vpop.f32.mrb[3].mxu0 }
  0xfe   : > { %v669_v39 = vpack.c.bf16 %v651_v36, %v651_v36 }
 0x100   : > { %1286 = vmatmul.mubr.bf16.vlgmr.msra.gmra.mrb[0].mxu1 %v669_v39 }
 0x101   : > { %1310 = vmatpush3.bf16.msra.mxu1 %v1363_v38  ;;  %1325 = vmatprep.mubr.msk.bf16.mxu1 %vm1384_vm0, %v1383_v1 }
 0x102   : > { %1311 = vmatprep.subr.bf16.mxu1 %v1383_v1 }
 0x105   : > { %1312 = vmatpush3.bf16.msra.mxu1 %v1364_v40 }
 0x106   : > { %1313 = vmatprep.subr.bf16.mxu1 %v1383_v1 }
 0x109   : > { %1314 = vmatpush3.bf16.msra.mxu1 %v1365_v41 }
 0x10a   : > { %1315 = vmatprep.subr.bf16.mxu1 %v1383_v1 }
 0x10d   : > { %1316 = vmatpush3.bf16.msra.mxu1 %v1366_v42 }
 0x10e   : > { %1317 = vmatprep.subr.bf16.mxu1 %v1383_v1 }
 0x111   : > { %1318 = vmatpush3.bf16.msra.mxu1 %v1367_v43 }
 0x112   : > { %1319 = vmatprep.subr.bf16.mxu1 %v1383_v1 }
 0x115   : > { %1320 = vmatpush3.bf16.msra.mxu1 %v1368_v44 }
 0x116   : > { %1321 = vmatprep.subr.bf16.mxu1 %v1383_v1 }
 0x119   : > { %v886_v47 = vpop.f32.mrb[4].mxu0  ;;  %1322 = vmatpush3.bf16.msra.mxu1 %v1369_v45 }
 0x11a   : > { %v887_v49 = vadd.f32 %v1193_v46, %v886_v47  ;;  %v1307_v50 = vpop.f32.mrb[5].mxu0  ;;  %1323 = vmatprep.subr.bf16.mxu1 %v1383_v1  ;;  %v1202_v1 = vld [vmem:[%s1666_s11] ss:$0 sm:$0xff] }
 0x11b   : > { %v889_v51 = vpop.f32.mrb[6].mxu0 }
 0x11c   : > { %v892_v52 = vmax.f32 %v887_v49, 0.0  ;;  %v1308_v53 = vpop.f32.mrb[7].mxu0 }
 0x11d   : > { %1324 = vmatpush3.bf16.msra.mxu1 %v1370_v48 }
 0x11e   : > { %v910_v54 = vpack.c.bf16 %v892_v52, %v892_v52 }
 0x120   : > { %1326 = vmatmul.mubr.bf16.vlgmr.msra.gmra.mrb[4].mxu1 %v910_v54 }
 0x1d3   : > { %v758_v57 = vpop.f32.mrb[0].mxu1 }
 0x1d4   : > { %v759_v58 = vadd.f32 %v1182_v55, %v758_v57  ;;  %v1287_v59 = vpop.f32.mrb[1].mxu1 }
 0x1d5   : > { %v761_v61 = vpop.f32.mrb[2].mxu1 }
 0x1d6   : > { %v770_v62 = vmul.f32 %v1191_v56, %v759_v58  ;;  %v1288_v63 = vpop.f32.mrb[3].mxu1 }
 0x1d8   : > { %v777_v0 = vadd.f32 %v1192_v60, %v770_v62 }
 0x1da   : > { %778 = vst [vmem:[%s520_s28] sm:$0xf] %v777_v0  ;;  %779 = vst [vmem:[%s524_s18 - $0x4] sm:$0x30] %v777_v0 }
 0x1f3   : > { %v999_v2 = vpop.f32.mrb[4].mxu1 }
 0x1f4   : > { %v1000_v3 = vadd.f32 %v1202_v1, %v999_v2  ;;  %v1327_v4 = vpop.f32.mrb[5].mxu1 }
 0x1f5   : > { %v1002_v5 = vpop.f32.mrb[6].mxu1 }
 0x1f6   : > { %v1005_v6 = vmul.f32 %v1191_v56, %v1000_v3  ;;  %v1328_v7 = vpop.f32.mrb[7].mxu1 }
 0x1f8   : > { %v1006_v8 = vadd.f32 %v1192_v60, %v1005_v6 }
 0x1fa   : > { %v1008_v9 = vand.u32 2147483647, %v1006_v8  ;;  %v1007_v15 = vmax.f32 %v1006_v8, 0.0 }
 0x1fc   : > { %v1009_v10 = vsub.f32 0.0, %v1008_v9 }
 0x1fe   : > { %v1010_v11 = vmul.f32 1.442695, %v1009_v10 }
 0x200   : > { %1371 = vpow2.f32 %v1010_v11 }
 0x20a   : > { %v1372_v12 = vpop.eup %1371 }
 0x20b   : > { %v1012_v13 = vadd.f32 1.0, %v1372_v12 }
 0x20d   : > { %1373 = vlog2.f32 %v1012_v13 }
 0x217   : > { %v1374_v14 = vpop.eup %1373 }
 0x218   : > { %v1014_v16 = vmul.f32 0.6931472, %v1374_v14 }
 0x21a   : > { %v1015_v17 = vadd.f32 %v1014_v16, %v1007_v15 }
 0x21c   : > { %v1016_v18 = vadd.f32 1e-06, %v1015_v17 }
 0x21e   : > { %1017 = vst [vmem:[%s528_s21] sm:$0x3] %v1016_v18 }
 0x21f PF: > { %s25_s29 = sadd.s32 1, %s1381_s29  }
 0x220   : > { %p22_p4 = scmp.ge.s32.totalorder %s25_s29, 4  }
 0x222   :  { %24 = sbr.rel (!%p22_p4) target bundleno = 1 (0x1), region = 131 }

// kernel: k2vae_forward.4
= control target key start
LH: loop header
LB: loop body
LE: loop exit
PB: predicated region body
PF: predicated region fallthrough
CT: control target
= control target key end

     0   :  { %v1443_v0 = vmov 0.0|0.0   ;;  %vm1444_vm0 = vmmov 0   ;;  %v1445_v4 = vmov 0.0   ;;  %s1446_s17 = smov 127   ;;  %vm138_vm1 = vcmask 1040384   ;;  %s1883_s2 = inlined_call_operand.vmem [shape: f32[128,128], index: 2, kind: input, shape index: {}]   ;;  %s1884_s3 = inlined_call_operand.vmem [shape: f32[2,4], index: 3, kind: input, shape index: {}]   ;;  %s1885_s0 = inlined_call_operand.vmem [shape: f32[2,4,128], index: 0, kind: input, shape index: {}]   ;;  %s1886_s11 = inlined_call_operand.vmem [shape: f32[2,4,128], index: 11, kind: output, shape index: {0}]   ;;  %s1887_s5 = inlined_call_operand.vmem [shape: f32[128,128], index: 5, kind: input, shape index: {}]   ;;  %s1888_s4 = inlined_call_operand.vmem [shape: f32[1,128], index: 4, kind: input, shape index: {}]   ;;  %s1889_s6 = inlined_call_operand.vmem [shape: f32[1,128], index: 6, kind: input, shape index: {}]   ;;  %s1890_s7 = inlined_call_operand.vmem [shape: f32[1,128], index: 7, kind: input, shape index: {}]   ;;  %s1891_s10 = inlined_call_operand.vmem [shape: f32[1,128], index: 10, kind: input, shape index: {}]   ;;  %s1892_s8 = inlined_call_operand.vmem [shape: f32[1,128], index: 8, kind: input, shape index: {}]   ;;  %s1893_s9 = inlined_call_operand.vmem [shape: f32[1,128], index: 9, kind: input, shape index: {}]   ;;  %s1894_s1 = inlined_call_operand.vmem [shape: f32[2,2,128], index: 1, kind: input, shape index: {}]   ;;  %s1895_s12 = inlined_call_operand.vmem [shape: f32[2,2,384], index: 12, kind: output, shape index: {1}]  }
   0x1   :  { %1292 = vmatprep.subr.bf16.mxu0 %v1443_v0  ;;  %v1518_v1 = vld [vmem:[%s1883_s2] sm:$0xff]  ;;  %v1523_v2 = vld [vmem:[%s1883_s2 + $0x8] sm:$0xff]  ;;  %v1528_v3 = vld [vmem:[%s1883_s2 + $0x10] sm:$0xff]  ;;  %1153 = vmatprep.mubr.msk.f32.mxu0 %vm1444_vm0, %v1445_v4  ;;  %vm161_vm2 = vcmask 1042432   ;;  %vm158_vm3 = vcmask 23552   ;;  %vm455_vm4 = vcmask 1041409  }
   0x2   :  { %v1534_v5 = vpack.c.bf16 %v1523_v2, %v1518_v1  ;;  %v1539_v6 = vld [vmem:[%s1883_s2 + $0x18] sm:$0xff]  ;;  %1156 = vmatprep.subr.mxu1 %v1445_v4  ;;  %1158 = vmatprep.mubr.msk.f32.mxu1 %vm1444_vm0, %v1445_v4  ;;  %v1553_v8 = vld [vmem:[%s1883_s2 + $0x20] sm:$0xff]  ;;  %v1558_v9 = vld [vmem:[%s1883_s2 + $0x28] sm:$0xff] }
   0x3   :  { %v1547_v7 = vpack.c.bf16 %v1539_v6, %v1528_v3  ;;  %v145_v10 = vld [vmem:[%s1884_s3] sm:$0x3]  ;;  %v1566_v11 = vpack.c.bf16 %v1558_v9, %v1553_v8  ;;  %v1572_v12 = vld [vmem:[%s1883_s2 + $0x30] sm:$0xff]  ;;  %v1577_v13 = vld [vmem:[%s1883_s2 + $0x38] sm:$0xff] }
   0x4   :  { %1294 = vmatpush3.bf16.msra.mxu0 %v1534_v5  ;;  %154 = vrot.lane.b32.xlu0 %v145_v10, %s1446_s17  ;;  %v1582_v14 = vpack.c.bf16 %v1577_v13, %v1572_v12  ;;  %v1588_v15 = vld [vmem:[%s1883_s2 + $0x40] sm:$0xff]  ;;  %v1593_v16 = vld [vmem:[%s1883_s2 + $0x48] sm:$0xff]  ;;  %v1604_v18 = vld [vmem:[%s1883_s2 + $0x50] sm:$0xff] }
   0x5   :  { %1295 = vmatprep.subr.bf16.mxu0 %v1443_v0  ;;  %v1598_v17 = vpack.c.bf16 %v1593_v16, %v1588_v15  ;;  %v1609_v19 = vld [vmem:[%s1883_s2 + $0x58] sm:$0xff]  ;;  %v1620_v21 = vld [vmem:[%s1883_s2 + $0x60] sm:$0xff]  ;;  %v1625_v22 = vld [vmem:[%s1883_s2 + $0x68] sm:$0xff] }
   0x6   :  { %v1614_v20 = vpack.c.bf16 %v1609_v19, %v1604_v18  ;;  %v1630_v23 = vpack.c.bf16 %v1625_v22, %v1620_v21  ;;  %v1636_v24 = vld [vmem:[%s1883_s2 + $0x70] sm:$0xff]  ;;  %v1641_v25 = vld [vmem:[%s1883_s2 + $0x78] sm:$0xff]  ;;  %v1651_v27 = vld [vmem:[%s1885_s0] sm:$0xf] }
   0x7   :  { %v1646_v26 = vpack.c.bf16 %v1641_v25, %v1636_v24  ;;  %v1656_v28 = vld [vmem:[%s1885_s0 + $0x4] sm:$0xf]  ;;  %v530_v43 = vld [vmem:[%s1887_s5 + $0x8] sm:$0xff]  ;;  %v531_v45 = vld [vmem:[%s1887_s5 + $0x10] sm:$0xff] }
   0x8   :  { %1297 = vmatpush3.bf16.msra.mxu0 %v1547_v7  ;;  %v60_v29 = vcombine.low %v1651_v27, %v1656_v28  ;;  %v529_v42 = vld [vmem:[%s1887_s5] sm:$0xff]  ;;  %v532_v46 = vld [vmem:[%s1887_s5 + $0x18] sm:$0xff]  ;;  %v534_v49 = vld [vmem:[%s1887_s5 + $0x28] sm:$0xff] }
   0x9   :  { %1298 = vmatprep.subr.bf16.mxu0 %v1443_v0  ;;  %v1719_v44 = vpack.c.bf16 %v530_v43, %v529_v42  ;;  %v1729_v47 = vpack.c.bf16 %v532_v46, %v531_v45  ;;  %v533_v48 = vld [vmem:[%s1887_s5 + $0x20] sm:$0xff]  ;;  %v535_v51 = vld [vmem:[%s1887_s5 + $0x30] sm:$0xff]  ;;  %v536_v52 = vld [vmem:[%s1887_s5 + $0x38] sm:$0xff] }
   0xa   :  { %v1739_v50 = vpack.c.bf16 %v534_v49, %v533_v48  ;;  %v1749_v53 = vpack.c.bf16 %v536_v52, %v535_v51  ;;  %v537_v54 = vld [vmem:[%s1887_s5 + $0x40] sm:$0xff]  ;;  %v538_v55 = vld [vmem:[%s1887_s5 + $0x48] sm:$0xff]  ;;  %v539_v57 = vld [vmem:[%s1887_s5 + $0x50] sm:$0xff] }
   0xb   :  { %v1759_v56 = vpack.c.bf16 %v538_v55, %v537_v54  ;;  %v540_v58 = vld [vmem:[%s1887_s5 + $0x58] sm:$0xff]  ;;  %v541_v60 = vld [vmem:[%s1887_s5 + $0x60] sm:$0xff]  ;;  %v542_v61 = vld [vmem:[%s1887_s5 + $0x68] sm:$0xff] }
   0xc   :  { %1300 = vmatpush3.bf16.msra.mxu0 %v1566_v11  ;;  %v1769_v59 = vpack.c.bf16 %v540_v58, %v539_v57  ;;  %v1779_v62 = vpack.c.bf16 %v542_v61, %v541_v60  ;;  %v543_v63 = vld [vmem:[%s1887_s5 + $0x70] sm:$0xff]  ;;  %v1031_v49 = vld [vmem:[%s1891_s10] ss:$0 sm:$0xff] }
   0xd   :  { %1301 = vmatprep.subr.bf16.mxu0 %v1443_v0  ;;  %v1032_v52 = vld [vmem:[%s1892_s8] ss:$0 sm:$0xff] }
  0x10   :  { %1303 = vmatpush3.bf16.msra.mxu0 %v1582_v14 }
  0x11   :  { %1304 = vmatprep.subr.bf16.mxu0 %v1443_v0 }
  0x14   :  { %1306 = vmatpush3.bf16.msra.mxu0 %v1598_v17 }
  0x15   :  { %1307 = vmatprep.subr.bf16.mxu0 %v1443_v0 }
  0x18   :  { %1309 = vmatpush3.bf16.msra.mxu0 %v1614_v20 }
  0x19   :  { %1310 = vmatprep.subr.bf16.mxu0 %v1443_v0 }
  0x1c   :  { %1312 = vmatpush3.bf16.msra.mxu0 %v1630_v23 }
  0x1d   :  { %1313 = vmatprep.subr.bf16.mxu0 %v1443_v0 }
  0x20   :  { %1315 = vmatpush3.bf16.msra.mxu0 %v1646_v26 }
  0x23   :  { %1154 = vmatmul.mubr.f32.vlgmr.msra.gmra.mrb[0].mxu0 %v60_v29 }
  0x24   :  { %522 = vmatprep.mubr.f32.mxu0 %v1445_v4 }
  0x76   :  { %v155_v39 = vpop.permute.xlu0 %154 }
  0xf6   :  { %v128_v30 = vpop.f32.mrb[0].mxu0 }
  0xf7   :  { %v133_v31 = vcombine.high %v128_v30, %v128_v30  ;;  %v134_v32 = vrot.slane %v128_v30, 7  ;;  %v1155_v33 = vpop.f32.mrb[1].mxu0 }
  0xf9   :  { %v135_v34 = vrot.slane %v133_v31, 7  ;;  %v139_v35 = vsel %vm138_vm1, %v1651_v27, %v134_v32  ;;  %v143_v36 = vsub.f32 %v1651_v27, %v134_v32 }
  0xfa   :  { %141 = vst [vmem:[%s1886_s11] sm:$0xf] %v139_v35 }
  0xfb   :  { %v140_v37 = vsel %vm138_vm1, %v1656_v28, %v135_v34  ;;  %v144_v38 = vsub.f32 %v1656_v28, %v135_v34  ;;  %v157_v40 = vrot.slane %v143_v36, 1 }
  0xfc   :  { %142 = vst [vmem:[%s1886_s11 + $0x4] sm:$0xf] %v140_v37 }
  0xfd   :  { %v235_v41 = vrot.slane %v144_v38, 1  ;;  %1157 = vmatpush3.msk.msra.mxu1 %vm161_vm2, %v157_v40 }
  0xfe   :  { %1159 = vmatmul.mubr.msk.f32.vlgmr.msra.gmra.mrb[0].mxu1 %vm158_vm3, %v155_v39  ;;  %1161 = vmatprep.subr.mxu1 %v1445_v4 }
  0xff   :  { %1162 = vmatpush3.msk.msra.mxu1 %vm161_vm2, %v235_v41  ;;  %1163 = vmatprep.mubr.msk.f32.mxu1 %vm1444_vm0, %v1445_v4 }
 0x100   :  { %1317 = vmatprep.subr.bf16.mxu1 %v1534_v5 }
 0x102   :  { %1164 = vmatmul.mubr.msk.f32.vlgmr.msra.gmra.mrb[2].mxu1 %vm158_vm3, %v155_v39 }
 0x103   :  { %1319 = vmatpush3.bf16.msra.mxu1 %v1534_v5  ;;  %1198 = vmatprep.mubr.f32.mxu1 %v1518_v1  ;;  %v544_v1 = vld [vmem:[%s1887_s5 + $0x78] sm:$0xff] }
 0x104   :  { %1321 = vmatprep.subr.bf16.mxu1 %v1547_v7 }
 0x107   :  { %1323 = vmatpush3.bf16.msra.mxu1 %v1547_v7 }
 0x108   :  { %1325 = vmatprep.subr.bf16.mxu1 %v1566_v11 }
 0x10b   :  { %1327 = vmatpush3.bf16.msra.mxu1 %v1566_v11 }
 0x10c   :  { %1329 = vmatprep.subr.bf16.mxu1 %v1582_v14 }
 0x10f   :  { %1331 = vmatpush3.bf16.msra.mxu1 %v1582_v14 }
 0x110   :  { %1333 = vmatprep.subr.bf16.mxu1 %v1598_v17 }
 0x113   :  { %1335 = vmatpush3.bf16.msra.mxu1 %v1598_v17 }
 0x114   :  { %1337 = vmatprep.subr.bf16.mxu1 %v1614_v20 }
 0x117   :  { %1339 = vmatpush3.bf16.msra.mxu1 %v1614_v20 }
 0x118   :  { %1341 = vmatprep.subr.bf16.mxu1 %v1630_v23 }
 0x11b   :  { %1343 = vmatpush3.bf16.msra.mxu1 %v1630_v23 }
 0x11c   :  { %1345 = vmatprep.subr.bf16.mxu1 %v1646_v26 }
 0x11f   :  { %1347 = vmatpush3.bf16.msra.mxu1 %v1646_v26 }
 0x120   :  { %1380 = vmatprep.subr.bf16.mxu1 %v1443_v0 }
 0x122   :  { %1199 = vmatmul.mubr.f32.vlgmr.msra.gmra.mrb[4].mxu1 %v1523_v2  ;;  %v1789_v2 = vpack.c.bf16 %v544_v1, %v543_v63 }
 0x123   :  { %1201 = vmatprep.mubr.f32.mxu1 %v1528_v3  ;;  %1382 = vmatpush3.bf16.msra.mxu1 %v1719_v44  ;;  %v453_v3 = vrot.slane %v1651_v27, 3 }
 0x124   :  { %1383 = vmatprep.subr.bf16.mxu1 %v1443_v0 }
 0x126   :  { %1202 = vmatmul.mubr.f32.gmra.mrb[6].mxu1 %v1539_v6  ;;  %v454_v6 = vrot.slane %v1656_v28, 2 }
 0x127   :  { %1204 = vmatprep.mubr.f32.mxu1 %v1553_v8  ;;  %1385 = vmatpush3.bf16.msra.mxu1 %v1729_v47 }
 0x128   :  { %1386 = vmatprep.subr.bf16.mxu1 %v1443_v0  ;;  %v456_v8 = vsel %vm455_vm4, %v454_v6, %v453_v3  ;;  %v551_v3 = vld [vmem:[%s1894_s1 + $0x2] sm:$0x3] }
 0x12a   :  { %1205 = vmatmul.mubr.f32.gmra.mrb[8].mxu1 %v1558_v9  ;;  %v1026_v9 = vld [vmem:[%s1888_s4] ss:$0 sm:$0xff] }
 0x12b   :  { %1207 = vmatprep.mubr.f32.mxu1 %v1572_v12  ;;  %1388 = vmatpush3.bf16.msra.mxu1 %v1739_v50 }
 0x12c   :  { %1389 = vmatprep.subr.bf16.mxu1 %v1443_v0 }
 0x12e   :  { %1208 = vmatmul.mubr.f32.gmra.mrb[10].mxu1 %v1577_v13 }
 0x12f   :  { %1210 = vmatprep.mubr.f32.mxu1 %v1588_v15  ;;  %1391 = vmatpush3.bf16.msra.mxu1 %v1749_v53 }
 0x130   :  { %1392 = vmatprep.subr.bf16.mxu1 %v1443_v0 }
 0x132   :  { %1211 = vmatmul.mubr.f32.gmra.mrb[12].mxu1 %v1593_v16 }
 0x133   :  { %1213 = vmatprep.mubr.f32.mxu1 %v1604_v18  ;;  %1394 = vmatpush3.bf16.msra.mxu1 %v1759_v56 }
 0x134   :  { %1395 = vmatprep.subr.bf16.mxu1 %v1443_v0 }
 0x136   :  { %1214 = vmatmul.mubr.f32.gmra.mrb[14].mxu1 %v1609_v19 }
 0x137   :  { %1216 = vmatprep.mubr.f32.mxu1 %v1620_v21  ;;  %1397 = vmatpush3.bf16.msra.mxu1 %v1769_v59 }
 0x138   :  { %1398 = vmatprep.subr.bf16.mxu1 %v1443_v0 }
 0x13a   :  { %1217 = vmatmul.mubr.f32.gmra.mrb[16].mxu1 %v1625_v22 }
 0x13b   :  { %1219 = vmatprep.mubr.f32.mxu1 %v1636_v24  ;;  %1400 = vmatpush3.bf16.msra.mxu1 %v1779_v62 }
 0x13c   :  { %1401 = vmatprep.subr.bf16.mxu1 %v1443_v0 }
 0x13e   :  { %1220 = vmatmul.mubr.f32.gmra.mrb[18].mxu1 %v1641_v25 }
 0x13f   :  { %1254 = vmatprep.mubr.msk.f32.mxu1 %vm1444_vm0, %v1445_v4  ;;  %1403 = vmatpush3.bf16.msra.mxu1 %v1789_v2 }
 0x142   :  { %1255 = vmatmul.mubr.f32.vlgmr.msra.gmra.mrb[20].mxu1 %v456_v8 }
 0x1d1   :  { %v230_v10 = vpop.f32.mrb[0].mxu1 }
 0x1d2   :  { %v231_v12 = vadd.f32 %v1026_v9, %v230_v10  ;;  %v1160_v13 = vpop.f32.mrb[1].mxu1 }
 0x1d4   :  { %v791_v16 = vrot.slane %v231_v12, 1 }
 0x1d5   :  { %v304_v15 = vpop.f32.mrb[2].mxu1 }
 0x1d6   :  { %v305_v18 = vadd.f32 %v1026_v9, %v304_v15  ;;  %v1165_v19 = vpop.f32.mrb[3].mxu1  ;;  %v683_v9 = vrot.slane %v551_v3, 7 }
 0x1d8   :  { %v690_v21 = vrot.slane %v305_v18, 7  ;;  %v1799_v22 = vsel %vm455_vm4, %v305_v18, %v791_v16 }
 0x1da   :  { %v1802_v24 = vsel %vm455_vm4, %v690_v21, %v231_v12  ;;  %v550_v12 = vld [vmem:[%s1894_s1] sm:$0x3] }
 0x1db   :  { %v684_v18 = vsel %vm455_vm4, %v683_v9, %v550_v12 }
 0x1f5   :  { %v1200_v25 = vpop.f32.mrb[4].mxu1 }
 0x1f6   :  { %v374_v27 = vpop.f32.mrb[5].mxu1 }
 0x1f7   :  { %v1348_v28 = vpack.c.bf16 %v1200_v25, %v374_v27 }
 0x1f9   :  { %v1203_v29 = vpop.f32.mrb[6].mxu1  ;;  %1349 = vmatprep.subr.bf16.mxu0 %v1348_v28 }
 0x1fa   :  { %v384_v30 = vpop.f32.mrb[7].mxu1  ;;  %1351 = vmatpush1.bf16.msra.mxu0 %v1534_v5 }
 0x1fb   :  { %v1352_v31 = vpack.c.bf16 %v1203_v29, %v384_v30 }
 0x1fd   :  { %v1206_v32 = vpop.f32.mrb[8].mxu1  ;;  %1353 = vmatprep.subr.bf16.mxu0 %v1352_v31 }
 0x1fe   :  { %v394_v33 = vpop.f32.mrb[9].mxu1  ;;  %1355 = vmatpush1.bf16.msra.mxu0 %v1547_v7 }
 0x1ff   :  { %v1356_v34 = vpack.c.bf16 %v1206_v32, %v394_v33 }
 0x201   :  { %v1209_v35 = vpop.f32.mrb[10].mxu1  ;;  %1357 = vmatprep.subr.bf16.mxu0 %v1356_v34 }
 0x202   :  { %v404_v36 = vpop.f32.mrb[11].mxu1  ;;  %1359 = vmatpush1.bf16.msra.mxu0 %v1566_v11 }
 0x203   :  { %v1360_v37 = vpack.c.bf16 %v1209_v35, %v404_v36 }
 0x205   :  { %v1212_v38 = vpop.f32.mrb[12].mxu1  ;;  %1361 = vmatprep.subr.bf16.mxu0 %v1360_v37 }
 0x206   :  { %v414_v39 = vpop.f32.mrb[13].mxu1  ;;  %1363 = vmatpush1.bf16.msra.mxu0 %v1582_v14 }
 0x207   :  { %v1364_v40 = vpack.c.bf16 %v1212_v38, %v414_v39 }
 0x209   :  { %v1215_v5 = vpop.f32.mrb[14].mxu1  ;;  %1365 = vmatprep.subr.bf16.mxu0 %v1364_v40 }
 0x20a   :  { %v424_v41 = vpop.f32.mrb[15].mxu1  ;;  %1367 = vmatpush1.bf16.msra.mxu0 %v1598_v17  ;;  %v630_v17 = vlaneseq }
 0x20b   :  { %v1368_v42 = vpack.c.bf16 %v1215_v5, %v424_v41 }
 0x20d   :  { %v1218_v7 = vpop.f32.mrb[16].mxu1  ;;  %1369 = vmatprep.subr.bf16.mxu0 %v1368_v42  ;;  %v1447_v42 = vmov 1966171168  }
 0x20e   :  { %v434_v43 = vpop.f32.mrb[17].mxu1  ;;  %1371 = vmatpush1.bf16.msra.mxu0 %v1614_v20  ;;  %v1830_v20 = vshrl.u32 %v630_v17, 7 }
 0x20f   :  { %v1372_v45 = vpack.c.bf16 %v1218_v7, %v434_v43  ;;  %v798_v7 = vunpack.c.l.s4 %v1447_v42 }
 0x211   :  { %v1221_v11 = vpop.f32.mrb[18].mxu1  ;;  %1373 = vmatprep.subr.bf16.mxu0 %v1372_v45 }
 0x212   :  { %v444_v46 = vpop.f32.mrb[19].mxu1  ;;  %1375 = vmatpush1.bf16.msra.mxu0 %v1630_v23  ;;  %v545_v23 = vld [vmem:[%s1889_s6] sm:$0x1] }
 0x213   :  { %v1376_v48 = vpack.c.bf16 %v1221_v11, %v444_v46  ;;  %v786_v46 = vrot.slane %v550_v12, 1 }
 0x215   :  { %1377 = vmatprep.subr.bf16.mxu0 %v1376_v48 }
 0x216   :  { %1379 = vmatpush1.bf16.msra.mxu0 %v1646_v26  ;;  %v1836_v26 = vsub.s32 0, %v1830_v20 }
 0x217   :  { %1404 = vmatprep.subr.bf16.mxu0 %v1443_v0 }
 0x219   :  { %523 = vmatmul.mubr.f32.vlgmr.msra.gmra.mrb[2].mxu0 %v456_v8 }
 0x21a   :  { %1406 = vmatpush3.bf16.msra.mxu0 %v1719_v44  ;;  %1289 = vmatprep.mubr.msk.f32.mxu0 %vm1444_vm0, %v1445_v4  ;;  %v625_v4 = vpop.f32.mrb[20].mxu1  ;;  %v546_v44 = vmul.f32 %v545_v23, %v545_v23 }
 0x21b   :  { %1407 = vmatprep.subr.bf16.mxu0 %v1443_v0  ;;  %v1256_v14 = vpop.f32.mrb[21].mxu1 }
 0x21e   :  { %1409 = vmatpush3.bf16.msra.mxu0 %v1729_v47  ;;  %v633_v47 = vrot.slane %v546_v44, %v1836_v26  ;;  %v787_v44 = vsel %vm455_vm4, %v551_v3, %v786_v46 }
 0x21f   :  { %1410 = vmatprep.subr.bf16.mxu0 %v1443_v0 }
 0x222   :  { %1412 = vmatpush3.bf16.msra.mxu0 %v1739_v50  ;;  %v635_v50 = vmul.f32 %v1031_v49, %v633_v47 }
 0x223   :  { %1413 = vmatprep.subr.bf16.mxu0 %v1443_v0 }
 0x226   :  { %1415 = vmatpush3.bf16.msra.mxu0 %v1749_v53  ;;  %v642_v53 = vadd.f32 %v1032_v52, %v635_v50 }
 0x227   :  { %1416 = vmatprep.subr.bf16.mxu0 %v1443_v0 }
 0x22a   :  { %1418 = vmatpush3.bf16.msra.mxu0 %v1759_v56  ;;  %v1033_v56 = vld [vmem:[%s1893_s9] ss:$0 sm:$0xff] }
 0x22b   :  { %1419 = vmatprep.subr.bf16.mxu0 %v1443_v0 }
 0x22e   :  { %1421 = vmatpush3.bf16.msra.mxu0 %v1769_v59 }
 0x22f   :  { %1422 = vmatprep.subr.bf16.mxu0 %v1443_v0 }
 0x232   :  { %1424 = vmatpush3.bf16.msra.mxu0 %v1779_v62 }
 0x233   :  { %1425 = vmatprep.subr.bf16.mxu0 %v1443_v0  ;;  %v547_v0 = vld [vmem:[%s1890_s7] sm:$0x1] }
 0x234   :  { %v651_v51 = vmul.f32 %v547_v0, %v547_v0  ;;  %v647_v58 = vrot.slane %v547_v0, %v1836_v26 }
 0x236   :  { %1427 = vmatpush3.bf16.msra.mxu0 %v1789_v2  ;;  %v656_v54 = vrot.slane %v651_v51, %v1836_v26  ;;  %v666_v59 = vmul.f32 %v647_v58, %v642_v53  ;;  %v649_v10 = vmul.f32 %v647_v58, %v625_v4 }
 0x238   :  { %v658_v55 = vmul.f32 %v656_v54, %v642_v53 }
 0x23a   :  { %v665_v57 = vadd.f32 %v1033_v56, %v658_v55  ;;  %v1448_v55 = vmov 1983009808  }
 0x23c   :  { %1435 = vrcp.f32 %v665_v57 }
 0x246   :  { %v1436_v60 = vpop.eup %1435 }
 0x247   :  { %v668_v61 = vmul.f32 %v1436_v60, %v666_v59 }
 0x249   :  { %v671_v62 = vmul.f32 %v668_v61, %v647_v58 }
 0x24b   :  { %v672_v63 = vsub.f32 1.0, %v671_v62 }
 0x24d   :  { %v673_v1 = vmul.f32 %v672_v63, %v642_v53 }
 0x24f   :  { %1437 = vrsqrt.f32 %v673_v1  ;;  %vm676_vm5 = vcmp.eq.f32.partialorder %v673_v1, inf  ;;  %v679_v8 = vand.u32 2147483648, %v673_v1  ;;  %vm678_vm6 = vcmp.eq.f32.partialorder %v673_v1, 0.0 }
 0x250   :  { %v765_v32 = vmul.f32 %v673_v1, %v633_v47 }
 0x252   :  { %v766_v33 = vadd.f32 %v1032_v52, %v765_v32 }
 0x254   :  { %v769_v34 = vmul.f32 %v766_v33, %v656_v54  ;;  %v771_v36 = vmul.f32 %v766_v33, %v647_v58 }
 0x256   :  { %v770_v35 = vadd.f32 %v1033_v56, %v769_v34  ;;  %v984_v56 = vunpack.c.l.s4 %v1448_v55 }
 0x258   :  { %1439 = vrcp.f32 %v770_v35 }
 0x259   :  { %v1438_v2 = vpop.eup %1437 }
 0x25a   :  { %v675_v6 = vmul.f32 %v1438_v2, %v673_v1 }
 0x25c   :  { %v677_v13 = vsel %vm676_vm5, %v673_v1, %v675_v6 }
 0x25d   :  { %v680_v16 = vsel %vm678_vm6, %v679_v8, %v677_v13 }
 0x25e   :  { %v686_v27 = vmul.f32 %v684_v18, %v680_v16 }
 0x262   :  { %v1440_v37 = vpop.eup %1439 }
 0x263   :  { %v773_v38 = vmul.f32 %v1440_v37, %v771_v36 }
 0x265   :  { %v776_v39 = vmul.f32 %v773_v38, %v647_v58 }
 0x267   :  { %v777_v40 = vsub.f32 1.0, %v776_v39 }
 0x269   :  { %v778_v5 = vmul.f32 %v777_v40, %v766_v33 }
 0x26b   :  { %1441 = vrsqrt.f32 %v778_v5  ;;  %vm781_vm7 = vcmp.eq.f32.partialorder %v778_v5, inf  ;;  %v784_v45 = vand.u32 2147483648, %v778_v5  ;;  %vm783_vm8 = vcmp.eq.f32.partialorder %v778_v5, 0.0 }
 0x275   :  { %v1442_v41 = vpop.eup %1441 }
 0x276   :  { %v780_v43 = vmul.f32 %v1442_v41, %v778_v5 }
 0x278   :  { %v782_v11 = vsel %vm781_vm7, %v778_v5, %v780_v43 }
 0x279   :  { %v785_v17 = vsel %vm783_vm8, %v784_v45, %v782_v11 }
 0x27a   :  { %v789_v50 = vmul.f32 %v787_v44, %v785_v17 }
 0x2ec   :  { %v524_v15 = vpop.f32.mrb[2].mxu0 }
 0x2ed   :  { %v650_v19 = vsub.f32 %v524_v15, %v649_v10  ;;  %v526_v21 = vpop.f32.mrb[3].mxu0  ;;  %v985_v10 = vunpack.c.0.s8 %v984_v56 }
 0x2ef   :  { %v669_v25 = vmul.f32 %v668_v61, %v650_v19 }
 0x2f1   :  { %v670_v28 = vadd.f32 %v669_v25, %v625_v4 }
 0x2f3   :  { %v693_v29 = vadd.f32 %v1802_v24, %v670_v28  ;;  %1290 = vmatmul.mubr.f32.vlgmr.msra.gmra.mrb[4].mxu0 %v670_v28  ;;  %v687_v30 = vadd.f32 %v686_v27, %v670_v28  ;;  %v799_v24 = vunpack.c.0.s8 %v798_v7 }
 0x2f5   :  { %v694_v31 = vadd.f32 %v693_v29, %v687_v30  ;;  %v802_v48 = vsub.s32 %v799_v24, %v1830_v20 }
 0x2f7   :  { %v948_v47 = vrot.slane %v785_v17, %v802_v48  ;;  %v863_v51 = vrot.slane %v670_v28, %v802_v48  ;;  %v923_v52 = vrot.slane %v680_v16, %v802_v48  ;;  %v803_v62 = vrot.slane %v694_v31, %v802_v48 }
 0x2f8   :  { %v988_v31 = vsub.s32 %v985_v10, %v1830_v20 }
 0x2f9   :  { %v949_v53 = vcombine.high %v948_v47, %v948_v47  ;;  %v956_v61 = vrot.slane %v948_v47, %v802_v48  ;;  %v924_v63 = vcombine.high %v923_v52, %v923_v52  ;;  %v871_v8 = vrot.slane %v863_v51, %v802_v48 }
 0x2fa   :  { %v931_v9 = vrot.slane %v923_v52, %v802_v48  ;;  %v811_v30 = vrot.slane %v803_v62, %v802_v48 }
 0x2fb   :  { %v963_v1 = vrot.slane %v949_v53, %v802_v48  ;;  %v967_v16 = vrot.slane %v956_v61, %v1836_v26  ;;  %v938_v19 = vrot.slane %v924_v63, %v802_v48 }
 0x2fd   :  { %v974_v35 = vsel %vm138_vm1, %v931_v9, %v967_v16 }
 0x2fe   :  { %v996_v5 = vrot.slane %v974_v35, %v988_v31 }
 0x3c6   :  { %v761_v4 = vpop.f32.mrb[4].mxu0 }
 0x3c7   :  { %v767_v14 = vmul.f32 %v761_v4, %v647_v58  ;;  %v1291_v23 = vpop.f32.mrb[5].mxu0  ;;  %v864_v58 = vcombine.high %v863_v51, %v863_v51 }
 0x3c9   :  { %v768_v0 = vsub.f32 %v526_v21, %v767_v14  ;;  %v878_v18 = vrot.slane %v864_v58, %v802_v48  ;;  %v971_v21 = vrot.slane %v963_v1, %v1836_v26 }
 0x3cb   :  { %v774_v49 = vmul.f32 %v773_v38, %v768_v0  ;;  %v975_v39 = vsel %vm138_vm1, %v938_v19, %v971_v21 }
 0x3cc   :  { %v1012_v7 = vrot.slane %v975_v39, %v988_v31 }
 0x3cd   :  { %v775_v54 = vadd.f32 %v774_v49, %v761_v4 }
 0x3cf   :  { %v790_v57 = vadd.f32 %v789_v50, %v775_v54  ;;  %v794_v59 = vadd.f32 %v1799_v22, %v775_v54  ;;  %v888_v60 = vrot.slane %v775_v54, %v802_v48  ;;  %v804_v22 = vcombine.high %v803_v62, %v803_v62 }
 0x3d1   :  { %v795_v2 = vadd.f32 %v794_v59, %v790_v57  ;;  %v889_v3 = vcombine.high %v888_v60, %v888_v60  ;;  %v896_v6 = vrot.slane %v888_v60, %v802_v48  ;;  %v818_v36 = vrot.slane %v804_v22, %v802_v48 }
 0x3d3   :  { %v828_v12 = vrot.slane %v795_v2, %v802_v48  ;;  %v903_v13 = vrot.slane %v889_v3, %v802_v48  ;;  %v907_v15 = vrot.slane %v896_v6, %v1836_v26 }
 0x3d5   :  { %v829_v25 = vcombine.high %v828_v12, %v828_v12  ;;  %v836_v27 = vrot.slane %v828_v12, %v802_v48  ;;  %v911_v28 = vrot.slane %v903_v13, %v1836_v26  ;;  %v914_v29 = vsel %vm138_vm1, %v871_v8, %v907_v15 }
 0x3d7   :  { %v843_v32 = vrot.slane %v829_v25, %v802_v48  ;;  %v847_v33 = vrot.slane %v836_v27, %v1836_v26  ;;  %v915_v34 = vsel %vm138_vm1, %v878_v18, %v911_v28 }
 0x3d9   :  { %v851_v37 = vrot.slane %v843_v32, %v1836_v26  ;;  %v854_v38 = vsel %vm138_vm1, %v811_v30, %v847_v33 }
 0x3da   :  { %v982_v40 = vcombine.low %v854_v38, %v914_v29 }
 0x3db   :  { %v855_v41 = vsel %vm138_vm1, %v818_v36, %v851_v37 }
 0x3dc   :  { %v989_v42 = vrot.slane %v982_v40, %v988_v31  ;;  %v998_v20 = vcombine.low %v855_v41, %v915_v34 }
 0x3de   :  { %v997_v43 = vcombine.low %v989_v42, %v996_v5  ;;  %v1005_v24 = vrot.slane %v998_v20, %v988_v31 }
 0x3e0   :  { %v1013_v45 = vcombine.low %v1005_v24, %v1012_v7  ;;  %1016 = vst [vmem:[%s1895_s12] sm:$0x3f] %v997_v43 }
 0x3e2   :  { %1017 = vst [vmem:[%s1895_s12 + $0x6] sm:$0x3f] %v1013_v45 }

</bundles_post_ra>
